<compile_context>
chip_gen: v5e
topology: v5e:2x2
jax: 0.10.0
libtpu: 0.0.40
codegen_flags: <defaults>
</compile_context>

<pallas_src>
import jax
import jax.numpy as jnp
from jax.experimental import pallas as pl
from jax.experimental.pallas import tpu as pltpu


def make_kernel(u_length, recover_rate, death_rate, hidden_size):
    H = hidden_size
    # Packed-block row offsets (must match pack_operand).
    R_A3, R_C3, R_BHN, R_WL, R_MISC, R_SIRD = H, H + 1, H + 2, H + 3, H + 4, H + 5

    def kernel(p_ref, out_ref):
        # ---- hoisted, lane-aligned unpacking (once, before the unrolled loop) ----
        w_h3p = p_ref[0:H, :]                      # (H, 128) [W_hr|W_hz|W_hn|0-pad]
        a3 = p_ref[R_A3:R_A3 + 1, :]               # (1, 128) folded input-side weights
        c3 = p_ref[R_C3:R_C3 + 1, :]               # (1, 128) folded input-side biases
        b_hn_row = p_ref[R_BHN:R_BHN + 1, :]       # (1, 128) b_hn at lanes [2H:3H]
        w_lin = p_ref[R_WL:R_WL + 1, 0:H]          # (1, H)   decoder weight row
        b_lin = p_ref[R_MISC:R_MISC + 1, 0:1]      # (1, 1)   decoder bias
        y_1 = p_ref[R_MISC:R_MISC + 1, 1:2]        # (1, 1)   scalar "input" seed

        s = p_ref[R_SIRD:R_SIRD + 1, 0:1]          # SIRD state scalars
        i = p_ref[R_SIRD:R_SIRD + 1, 1:2]
        r_ = p_ref[R_SIRD:R_SIRD + 1, 2:3]
        d = p_ref[R_SIRD:R_SIRD + 1, 3:4]
        ntot = p_ref[R_SIRD:R_SIRD + 1, 4:5]
        inv_n = 1.0 / ntot                         # one exact reciprocal, hoisted

        h = jnp.zeros((1, H), jnp.float32)

        # ---- fused GRU + SIRD loop (fully unrolled; u_length is small) ----------
        for _ in range(u_length):
            # single MXU matmul per step; RHS (w_h3p) is loop-invariant/hoisted.
            gh = jnp.dot(h, w_h3p, preferred_element_type=jnp.float32)   # (1, 128)
            # input-side gates: encoder folded in -> scalar-broadcast FMA (VPU)
            gi = y_1 * a3 + c3                                           # (1, 128)

            # r|z gates: one sigmoid over the whole row (r @ [0:H], z @ [H:2H];
            # lanes [2H:] are don't-care but stay finite/bounded).
            act = jax.nn.sigmoid(gi + gh)                                # (1, 128)
            # align r with the n-gate block via one XLU lane rotate (shift = 2H)
            r_at_n = pltpu.roll(act, 2 * H, 1)                           # (1, 128)
            # n-gate computed in place on the full row; valid at lanes [2H:3H]
            n_full = jnp.tanh(gi + r_at_n * (gh + b_hn_row))             # (1, 128)

            z = act[:, H:2 * H]                                          # (1, H)
            n = n_full[:, 2 * H:3 * H]                                   # (1, H)
            h = (1.0 - z) * n + z * h                                    # (1, H)

            # decoder Linear(H -> 1) as VPU mul + lane reduce (no MXU)
            beta = jnp.sum(h * w_lin, axis=-1, keepdims=True) + b_lin    # (1, 1)
            y_1 = jnp.maximum(beta, 0.0) + 0.02                          # relu + 0.02

            # SIRD update consuming this step's beta (fused, rides idle VPU slots)
            si = s * i * y_1 * inv_n
            ir = i * recover_rate
            idd = i * death_rate
            r_ = r_ + ir
            d = d + idd
            s = s - si
            i = i + si - ir - idd

        out_ref[...] = jnp.concatenate([s, i, r_, d, ntot], axis=1)

    return kernel


def pack_operand(params, inp, sird, hidden_size, rows):
    """Fold the encoder into the input-side GRU projections and pack ALL operands
    (weights, biases, decoder, scalar input, SIRD state) into ONE lane-dense
    (rows, 128) f32 block so the kernel needs a single DMA and only lane-aligned
    sublane reads to unpack."""
    H = hidden_size
    w_i3 = jnp.concatenate([params["w_ir"], params["w_iz"], params["w_in"]], axis=1)   # (H, 3H)
    b_i3 = jnp.concatenate([params["b_ir"], params["b_iz"], params["b_in"]], axis=1)   # (1, 3H)
    # gi_g = (y_1*w_enc + b_enc) @ W_ig + b_ig = y_1 * (w_enc@W_ig) + (b_enc@W_ig + b_ig)
    a3 = params["w_enc"] @ w_i3                                                        # (1, 3H)
    c3 = params["b_enc"] @ w_i3 + b_i3                                                 # (1, 3H)
    # hidden-side r/z biases add linearly before the sigmoid -> fold them in too;
    # b_hn must stay inside r * (h@W_hn + b_hn), so it is kept separate.
    c3 = c3 + jnp.concatenate(
        [params["b_hr"], params["b_hz"], jnp.zeros((1, H), jnp.float32)], axis=1)

    w_h3 = jnp.concatenate([params["w_hr"], params["w_hz"], params["w_hn"]], axis=1)   # (H, 3H)

    blk = jnp.zeros((rows, 128), jnp.float32)
    blk = blk.at[0:H, 0:3 * H].set(w_h3.astype(jnp.float32))        # zero-padded 96 -> 128 lanes
    blk = blk.at[H, 0:3 * H].set(a3[0].astype(jnp.float32))
    blk = blk.at[H + 1, 0:3 * H].set(c3[0].astype(jnp.float32))
    blk = blk.at[H + 2, 2 * H:3 * H].set(params["b_hn"][0].astype(jnp.float32))  # n-gate aligned
    blk = blk.at[H + 3, 0:H].set(params["w_lin"][:, 0].astype(jnp.float32))
    blk = blk.at[H + 4, 0].set(params["b_lin"][0, 0].astype(jnp.float32))
    blk = blk.at[H + 4, 1].set(jnp.asarray(inp, jnp.float32).reshape(()))
    blk = blk.at[H + 5, 0:5].set(jnp.asarray(sird, jnp.float32).reshape(5))
    return blk


def rnn_step_forward(inp, sird, params, *, u_length, recover_rate, death_rate, hidden_size):
    H = hidden_size
    assert 3 * H <= 128, "gate row packing assumes 3*hidden_size <= 128 lanes"
    rows = ((H + 6 + 7) // 8) * 8                  # pad sublanes to a multiple of 8

    kernel = make_kernel(u_length, recover_rate, death_rate, H)
    blk = pack_operand(params, inp, sird, H, rows)

    out = pl.pallas_call(
        kernel,
        out_shape=jax.ShapeDtypeStruct((1, 5), jnp.float32),
        in_specs=[pl.BlockSpec(memory_space=pltpu.MemorySpace.VMEM)],
        out_specs=pl.BlockSpec(memory_space=pltpu.MemorySpace.VMEM),
    )(blk)
    return out.reshape(sird.shape)


def reference_forward(inp, sird, p, *, u_length, recover_rate, death_rate, hidden_size):
    """Pure-JAX replica of the PyTorch forward (same transposed param layout)."""
    H = hidden_size
    h = jnp.zeros((1, H), jnp.float32)
    y_1 = inp.reshape(1, 1).astype(jnp.float32)
    betat = []
    for _ in range(u_length):
        y = y_1 * p["w_enc"] + p["b_enc"]
        r = jax.nn.sigmoid(y @ p["w_ir"] + p["b_ir"] + h @ p["w_hr"] + p["b_hr"])
        z = jax.nn.sigmoid(y @ p["w_iz"] + p["b_iz"] + h @ p["w_hz"] + p["b_hz"])
        n = jnp.tanh(y @ p["w_in"] + p["b_in"] + r * (h @ p["w_hn"] + p["b_hn"]))
        h = (1.0 - z) * n + z * h
        y_1 = jnp.maximum(h @ p["w_lin"] + p["b_lin"], 0.0) + 0.02
        betat.append(y_1)
    x = sird.reshape(1, 5).astype(jnp.float32)
    s, i, r_, d, ntot = (x[:, k:k + 1] for k in range(5))
    for days in range(u_length):
        si = s * i * betat[days] / ntot
        ir = i * recover_rate
        idd = i * death_rate
        r_ = r_ + ir
        d = d + idd
        s = s - si
        i = i + si - ir - idd
    return jnp.concatenate([s, i, r_, d, ntot], axis=1).reshape(sird.shape)


def init_params(key, hidden_size):
    """Deterministic init matching the PyTorch module's parameter shapes,
    stored in the transposed (in, out) layout the kernel/reference consume."""
    H = hidden_size
    ks = jax.random.split(key, 10)
    bH = 1.0 / jnp.sqrt(H)

    # encoder: Linear(1, H)  (torch weight (H,1), bias (H,)) -> (1,H)/(1,H)
    w_enc = jax.random.uniform(ks[0], (1, H), jnp.float32, -1.0, 1.0)
    b_enc = jax.random.uniform(ks[1], (1, H), jnp.float32, -1.0, 1.0)

    # GRU: weight_ih_l0 (3H, H), weight_hh_l0 (3H, H), biases (3H,)
    w_ih = jax.random.uniform(ks[2], (3 * H, H), jnp.float32, -bH, bH)
    w_hh = jax.random.uniform(ks[3], (3 * H, H), jnp.float32, -bH, bH)
    b_ih = jax.random.uniform(ks[4], (3 * H,), jnp.float32, -bH, bH)
    b_hh = jax.random.uniform(ks[5], (3 * H,), jnp.float32, -bH, bH)

    def gate_w(w, g):   # transpose each (H, H) gate block -> (H, H) (in, out)
        return jnp.transpose(w[g * H:(g + 1) * H, :])

    def gate_b(b, g):
        return b[g * H:(g + 1) * H].reshape(1, H)

    # linear: Linear(H, 1) (torch weight (1,H), bias (1,)) -> (H,1)/(1,1)
    w_lin = jax.random.uniform(ks[6], (H, 1), jnp.float32, -bH, bH)
    b_lin = jax.random.uniform(ks[7], (1, 1), jnp.float32, -bH, bH)

    return {
        "w_enc": w_enc, "b_enc": b_enc,
        "w_ir": gate_w(w_ih, 0), "w_iz": gate_w(w_ih, 1), "w_in": gate_w(w_ih, 2),
        "w_hr": gate_w(w_hh, 0), "w_hz": gate_w(w_hh, 1), "w_hn": gate_w(w_hh, 2),
        "b_ir": gate_b(b_ih, 0), "b_iz": gate_b(b_ih, 1), "b_in": gate_b(b_ih, 2),
        "b_hr": gate_b(b_hh, 0), "b_hz": gate_b(b_hh, 1), "b_hn": gate_b(b_hh, 2),
        "w_lin": w_lin, "b_lin": b_lin,
    }


if __name__ == "__main__":
    # Hyperparameters of the module
    u_length = 8
    recover_rate = 0.05
    death_rate = 0.01
    hidden_size = 32

    key = jax.random.PRNGKey(0)
    k_param, k_in, k_sird = jax.random.split(key, 3)

    params = init_params(k_param, hidden_size)

    # input: scalar beta seed with shape (seq=1, batch=1, feat=1)
    inp = jax.random.uniform(k_in, (1, 1, 1), jnp.float32, 0.0, 0.1)
    # sird: (1, 1, 5) = [S, I, R, D, N], a small synthetic epidemic state
    s0, i0 = 990.0, 10.0
    sird = jnp.array([[[s0, i0, 0.0, 0.0, s0 + i0]]], dtype=jnp.float32)
    sird = sird + 0.0 * jax.random.uniform(k_sird, sird.shape)  # keep key usage deterministic

    out = rnn_step_forward(
        inp, sird, params,
        u_length=u_length, recover_rate=recover_rate,
        death_rate=death_rate, hidden_size=hidden_size)
    out = jax.block_until_ready(out)

    ref = reference_forward(
        inp, sird, params,
        u_length=u_length, recover_rate=recover_rate,
        death_rate=death_rate, hidden_size=hidden_size)
    ref = jax.block_until_ready(ref)

    assert out.shape == sird.shape
    assert jnp.allclose(out, ref, rtol=1e-4, atol=1e-4), (out, ref)
    print("KERNEL_OK")
</pallas_src>

<mosaic_0001>
module attributes {stable_mosaic.version = 11 : i64} {
  func.func @kernel(%arg0: memref<40x128xf32, #tpu.memory_space<vmem>>, %arg1: memref<1x5xf32, #tpu.memory_space<vmem>>) attributes {dimension_semantics = [], scalar_prefetch = 0 : i64, scratch_operands = 0 : i64, tpu.core_type = #tpu.core_type<tc>} {
    %c0 = arith.constant 0 : index
    %c0_0 = arith.constant 0 : index
    %0 = vector.load %arg0[%c0, %c0_0] : memref<40x128xf32, #tpu.memory_space<vmem>>, vector<32x128xf32>
    %c32 = arith.constant 32 : index
    %c0_1 = arith.constant 0 : index
    %1 = vector.load %arg0[%c32, %c0_1] : memref<40x128xf32, #tpu.memory_space<vmem>>, vector<1x128xf32>
    %c33 = arith.constant 33 : index
    %c0_2 = arith.constant 0 : index
    %2 = vector.load %arg0[%c33, %c0_2] : memref<40x128xf32, #tpu.memory_space<vmem>>, vector<1x128xf32>
    %c34 = arith.constant 34 : index
    %c0_3 = arith.constant 0 : index
    %3 = vector.load %arg0[%c34, %c0_3] : memref<40x128xf32, #tpu.memory_space<vmem>>, vector<1x128xf32>
    %c35 = arith.constant 35 : index
    %c0_4 = arith.constant 0 : index
    %4 = vector.load %arg0[%c35, %c0_4] : memref<40x128xf32, #tpu.memory_space<vmem>>, vector<1x32xf32>
    %c36 = arith.constant 36 : index
    %c0_5 = arith.constant 0 : index
    %5 = vector.load %arg0[%c36, %c0_5] : memref<40x128xf32, #tpu.memory_space<vmem>>, vector<1x1xf32>
    %c36_6 = arith.constant 36 : index
    %c1 = arith.constant 1 : index
    %6 = vector.load %arg0[%c36_6, %c1] : memref<40x128xf32, #tpu.memory_space<vmem>>, vector<1x1xf32>
    %c37 = arith.constant 37 : index
    %c0_7 = arith.constant 0 : index
    %7 = vector.load %arg0[%c37, %c0_7] : memref<40x128xf32, #tpu.memory_space<vmem>>, vector<1x1xf32>
    %c37_8 = arith.constant 37 : index
    %c1_9 = arith.constant 1 : index
    %8 = vector.load %arg0[%c37_8, %c1_9] : memref<40x128xf32, #tpu.memory_space<vmem>>, vector<1x1xf32>
    %c37_10 = arith.constant 37 : index
    %c2 = arith.constant 2 : index
    %9 = vector.load %arg0[%c37_10, %c2] : memref<40x128xf32, #tpu.memory_space<vmem>>, vector<1x1xf32>
    %c37_11 = arith.constant 37 : index
    %c3 = arith.constant 3 : index
    %10 = vector.load %arg0[%c37_11, %c3] : memref<40x128xf32, #tpu.memory_space<vmem>>, vector<1x1xf32>
    %c37_12 = arith.constant 37 : index
    %c4 = arith.constant 4 : index
    %11 = vector.load %arg0[%c37_12, %c4] : memref<40x128xf32, #tpu.memory_space<vmem>>, vector<1x1xf32>
    %cst = arith.constant 1.000000e+00 : f32
    %12 = vector.broadcast %cst : f32 to vector<1x1xf32>
    %13 = arith.divf %12, %11 : vector<1x1xf32>
    %cst_13 = arith.constant 0.000000e+00 : f32
    %14 = vector.broadcast %cst_13 : f32 to vector<1x32xf32>
    %cst_14 = arith.constant dense<0.000000e+00> : vector<1x128xf32>
    %15 = tpu.matmul %14, %0, %cst_14 {dimension_numbers = #tpu.dot_dimension_numbers<[1], [0], [0], [1], [0, 0, 1, 1], [], []>} : vector<1x32xf32>, vector<32x128xf32>, vector<1x128xf32> -> vector<1x128xf32>
    %16 = vector.broadcast %6 : vector<1x1xf32> to vector<1x128xf32>
    %17 = arith.mulf %16, %1 : vector<1x128xf32>
    %18 = arith.addf %17, %2 : vector<1x128xf32>
    %19 = arith.addf %18, %15 : vector<1x128xf32>
    %20 = arith.negf %19 : vector<1x128xf32>
    %21 = math.exp %20 : vector<1x128xf32>
    %cst_15 = arith.constant 1.000000e+00 : f32
    %22 = vector.broadcast %cst_15 : f32 to vector<1x128xf32>
    %23 = arith.addf %22, %21 : vector<1x128xf32>
    %24 = arith.divf %22, %23 : vector<1x128xf32>
    %c64_i32 = arith.constant 64 : i32
    %25 = tpu.dynamic_rotate %24 by %c64_i32 dim 1 : vector<1x128xf32>, i32 -> vector<1x128xf32>
    %26 = arith.addf %15, %3 : vector<1x128xf32>
    %27 = arith.mulf %25, %26 : vector<1x128xf32>
    %28 = arith.addf %18, %27 : vector<1x128xf32>
    %29 = math.tanh %28 : vector<1x128xf32>
    %30 = vector.extract_strided_slice %24 {offsets = [0, 32], sizes = [1, 32], strides = [1, 1]} : vector<1x128xf32> to vector<1x32xf32>
    %31 = vector.extract_strided_slice %29 {offsets = [0, 64], sizes = [1, 32], strides = [1, 1]} : vector<1x128xf32> to vector<1x32xf32>
    %cst_16 = arith.constant 1.000000e+00 : f32
    %32 = vector.broadcast %cst_16 : f32 to vector<1x32xf32>
    %33 = arith.subf %32, %30 : vector<1x32xf32>
    %34 = arith.mulf %33, %31 : vector<1x32xf32>
    %35 = arith.mulf %30, %14 : vector<1x32xf32>
    %36 = arith.addf %34, %35 : vector<1x32xf32>
    %37 = arith.mulf %36, %4 : vector<1x32xf32>
    %cst_17 = arith.constant dense<0.000000e+00> : vector<1xf32>
    %38 = vector.multi_reduction <add>, %37, %cst_17 [1] : vector<1x32xf32> to vector<1xf32>
    %39 = vector.shape_cast %38 : vector<1xf32> to vector<1x1xf32>
    %40 = arith.addf %39, %5 : vector<1x1xf32>
    %cst_18 = arith.constant 0.000000e+00 : f32
    %41 = vector.broadcast %cst_18 : f32 to vector<1x1xf32>
    %42 = arith.maximumf %40, %41 : vector<1x1xf32>
    %cst_19 = arith.constant 2.000000e-02 : f32
    %43 = vector.broadcast %cst_19 : f32 to vector<1x1xf32>
    %44 = arith.addf %42, %43 : vector<1x1xf32>
    %45 = arith.mulf %7, %8 : vector<1x1xf32>
    %46 = arith.mulf %45, %44 : vector<1x1xf32>
    %47 = arith.mulf %46, %13 : vector<1x1xf32>
    %cst_20 = arith.constant 5.000000e-02 : f32
    %48 = vector.broadcast %cst_20 : f32 to vector<1x1xf32>
    %49 = arith.mulf %8, %48 : vector<1x1xf32>
    %cst_21 = arith.constant 0.00999999977 : f32
    %50 = vector.broadcast %cst_21 : f32 to vector<1x1xf32>
    %51 = arith.mulf %8, %50 : vector<1x1xf32>
    %52 = arith.addf %9, %49 : vector<1x1xf32>
    %53 = arith.addf %10, %51 : vector<1x1xf32>
    %54 = arith.subf %7, %47 : vector<1x1xf32>
    %55 = arith.addf %8, %47 : vector<1x1xf32>
    %56 = arith.subf %55, %49 : vector<1x1xf32>
    %57 = arith.subf %56, %51 : vector<1x1xf32>
    %cst_22 = arith.constant dense<0.000000e+00> : vector<1x128xf32>
    %58 = tpu.matmul %36, %0, %cst_22 {dimension_numbers = #tpu.dot_dimension_numbers<[1], [0], [0], [1], [0, 0, 1, 1], [], []>} : vector<1x32xf32>, vector<32x128xf32>, vector<1x128xf32> -> vector<1x128xf32>
    %59 = vector.broadcast %44 : vector<1x1xf32> to vector<1x128xf32>
    %60 = arith.mulf %59, %1 : vector<1x128xf32>
    %61 = arith.addf %60, %2 : vector<1x128xf32>
    %62 = arith.addf %61, %58 : vector<1x128xf32>
    %63 = arith.negf %62 : vector<1x128xf32>
    %64 = math.exp %63 : vector<1x128xf32>
    %cst_23 = arith.constant 1.000000e+00 : f32
    %65 = vector.broadcast %cst_23 : f32 to vector<1x128xf32>
    %66 = arith.addf %65, %64 : vector<1x128xf32>
    %67 = arith.divf %65, %66 : vector<1x128xf32>
    %c64_i32_24 = arith.constant 64 : i32
    %68 = tpu.dynamic_rotate %67 by %c64_i32_24 dim 1 : vector<1x128xf32>, i32 -> vector<1x128xf32>
    %69 = arith.addf %58, %3 : vector<1x128xf32>
    %70 = arith.mulf %68, %69 : vector<1x128xf32>
    %71 = arith.addf %61, %70 : vector<1x128xf32>
    %72 = math.tanh %71 : vector<1x128xf32>
    %73 = vector.extract_strided_slice %67 {offsets = [0, 32], sizes = [1, 32], strides = [1, 1]} : vector<1x128xf32> to vector<1x32xf32>
    %74 = vector.extract_strided_slice %72 {offsets = [0, 64], sizes = [1, 32], strides = [1, 1]} : vector<1x128xf32> to vector<1x32xf32>
    %cst_25 = arith.constant 1.000000e+00 : f32
    %75 = vector.broadcast %cst_25 : f32 to vector<1x32xf32>
    %76 = arith.subf %75, %73 : vector<1x32xf32>
    %77 = arith.mulf %76, %74 : vector<1x32xf32>
    %78 = arith.mulf %73, %36 : vector<1x32xf32>
    %79 = arith.addf %77, %78 : vector<1x32xf32>
    %80 = arith.mulf %79, %4 : vector<1x32xf32>
    %cst_26 = arith.constant dense<0.000000e+00> : vector<1xf32>
    %81 = vector.multi_reduction <add>, %80, %cst_26 [1] : vector<1x32xf32> to vector<1xf32>
    %82 = vector.shape_cast %81 : vector<1xf32> to vector<1x1xf32>
    %83 = arith.addf %82, %5 : vector<1x1xf32>
    %cst_27 = arith.constant 0.000000e+00 : f32
    %84 = vector.broadcast %cst_27 : f32 to vector<1x1xf32>
    %85 = arith.maximumf %83, %84 : vector<1x1xf32>
    %cst_28 = arith.constant 2.000000e-02 : f32
    %86 = vector.broadcast %cst_28 : f32 to vector<1x1xf32>
    %87 = arith.addf %85, %86 : vector<1x1xf32>
    %88 = arith.mulf %54, %57 : vector<1x1xf32>
    %89 = arith.mulf %88, %87 : vector<1x1xf32>
    %90 = arith.mulf %89, %13 : vector<1x1xf32>
    %cst_29 = arith.constant 5.000000e-02 : f32
    %91 = vector.broadcast %cst_29 : f32 to vector<1x1xf32>
    %92 = arith.mulf %57, %91 : vector<1x1xf32>
    %cst_30 = arith.constant 0.00999999977 : f32
    %93 = vector.broadcast %cst_30 : f32 to vector<1x1xf32>
    %94 = arith.mulf %57, %93 : vector<1x1xf32>
    %95 = arith.addf %52, %92 : vector<1x1xf32>
    %96 = arith.addf %53, %94 : vector<1x1xf32>
    %97 = arith.subf %54, %90 : vector<1x1xf32>
    %98 = arith.addf %57, %90 : vector<1x1xf32>
    %99 = arith.subf %98, %92 : vector<1x1xf32>
    %100 = arith.subf %99, %94 : vector<1x1xf32>
    %cst_31 = arith.constant dense<0.000000e+00> : vector<1x128xf32>
    %101 = tpu.matmul %79, %0, %cst_31 {dimension_numbers = #tpu.dot_dimension_numbers<[1], [0], [0], [1], [0, 0, 1, 1], [], []>} : vector<1x32xf32>, vector<32x128xf32>, vector<1x128xf32> -> vector<1x128xf32>
    %102 = vector.broadcast %87 : vector<1x1xf32> to vector<1x128xf32>
    %103 = arith.mulf %102, %1 : vector<1x128xf32>
    %104 = arith.addf %103, %2 : vector<1x128xf32>
    %105 = arith.addf %104, %101 : vector<1x128xf32>
    %106 = arith.negf %105 : vector<1x128xf32>
    %107 = math.exp %106 : vector<1x128xf32>
    %cst_32 = arith.constant 1.000000e+00 : f32
    %108 = vector.broadcast %cst_32 : f32 to vector<1x128xf32>
    %109 = arith.addf %108, %107 : vector<1x128xf32>
    %110 = arith.divf %108, %109 : vector<1x128xf32>
    %c64_i32_33 = arith.constant 64 : i32
    %111 = tpu.dynamic_rotate %110 by %c64_i32_33 dim 1 : vector<1x128xf32>, i32 -> vector<1x128xf32>
    %112 = arith.addf %101, %3 : vector<1x128xf32>
    %113 = arith.mulf %111, %112 : vector<1x128xf32>
    %114 = arith.addf %104, %113 : vector<1x128xf32>
    %115 = math.tanh %114 : vector<1x128xf32>
    %116 = vector.extract_strided_slice %110 {offsets = [0, 32], sizes = [1, 32], strides = [1, 1]} : vector<1x128xf32> to vector<1x32xf32>
    %117 = vector.extract_strided_slice %115 {offsets = [0, 64], sizes = [1, 32], strides = [1, 1]} : vector<1x128xf32> to vector<1x32xf32>
    %cst_34 = arith.constant 1.000000e+00 : f32
    %118 = vector.broadcast %cst_34 : f32 to vector<1x32xf32>
    %119 = arith.subf %118, %116 : vector<1x32xf32>
    %120 = arith.mulf %119, %117 : vector<1x32xf32>
    %121 = arith.mulf %116, %79 : vector<1x32xf32>
    %122 = arith.addf %120, %121 : vector<1x32xf32>
    %123 = arith.mulf %122, %4 : vector<1x32xf32>
    %cst_35 = arith.constant dense<0.000000e+00> : vector<1xf32>
    %124 = vector.multi_reduction <add>, %123, %cst_35 [1] : vector<1x32xf32> to vector<1xf32>
    %125 = vector.shape_cast %124 : vector<1xf32> to vector<1x1xf32>
    %126 = arith.addf %125, %5 : vector<1x1xf32>
    %cst_36 = arith.constant 0.000000e+00 : f32
    %127 = vector.broadcast %cst_36 : f32 to vector<1x1xf32>
    %128 = arith.maximumf %126, %127 : vector<1x1xf32>
    %cst_37 = arith.constant 2.000000e-02 : f32
    %129 = vector.broadcast %cst_37 : f32 to vector<1x1xf32>
    %130 = arith.addf %128, %129 : vector<1x1xf32>
    %131 = arith.mulf %97, %100 : vector<1x1xf32>
    %132 = arith.mulf %131, %130 : vector<1x1xf32>
    %133 = arith.mulf %132, %13 : vector<1x1xf32>
    %cst_38 = arith.constant 5.000000e-02 : f32
    %134 = vector.broadcast %cst_38 : f32 to vector<1x1xf32>
    %135 = arith.mulf %100, %134 : vector<1x1xf32>
    %cst_39 = arith.constant 0.00999999977 : f32
    %136 = vector.broadcast %cst_39 : f32 to vector<1x1xf32>
    %137 = arith.mulf %100, %136 : vector<1x1xf32>
    %138 = arith.addf %95, %135 : vector<1x1xf32>
    %139 = arith.addf %96, %137 : vector<1x1xf32>
    %140 = arith.subf %97, %133 : vector<1x1xf32>
    %141 = arith.addf %100, %133 : vector<1x1xf32>
    %142 = arith.subf %141, %135 : vector<1x1xf32>
    %143 = arith.subf %142, %137 : vector<1x1xf32>
    %cst_40 = arith.constant dense<0.000000e+00> : vector<1x128xf32>
    %144 = tpu.matmul %122, %0, %cst_40 {dimension_numbers = #tpu.dot_dimension_numbers<[1], [0], [0], [1], [0, 0, 1, 1], [], []>} : vector<1x32xf32>, vector<32x128xf32>, vector<1x128xf32> -> vector<1x128xf32>
    %145 = vector.broadcast %130 : vector<1x1xf32> to vector<1x128xf32>
    %146 = arith.mulf %145, %1 : vector<1x128xf32>
    %147 = arith.addf %146, %2 : vector<1x128xf32>
    %148 = arith.addf %147, %144 : vector<1x128xf32>
    %149 = arith.negf %148 : vector<1x128xf32>
    %150 = math.exp %149 : vector<1x128xf32>
    %cst_41 = arith.constant 1.000000e+00 : f32
    %151 = vector.broadcast %cst_41 : f32 to vector<1x128xf32>
    %152 = arith.addf %151, %150 : vector<1x128xf32>
    %153 = arith.divf %151, %152 : vector<1x128xf32>
    %c64_i32_42 = arith.constant 64 : i32
    %154 = tpu.dynamic_rotate %153 by %c64_i32_42 dim 1 : vector<1x128xf32>, i32 -> vector<1x128xf32>
    %155 = arith.addf %144, %3 : vector<1x128xf32>
    %156 = arith.mulf %154, %155 : vector<1x128xf32>
    %157 = arith.addf %147, %156 : vector<1x128xf32>
    %158 = math.tanh %157 : vector<1x128xf32>
    %159 = vector.extract_strided_slice %153 {offsets = [0, 32], sizes = [1, 32], strides = [1, 1]} : vector<1x128xf32> to vector<1x32xf32>
    %160 = vector.extract_strided_slice %158 {offsets = [0, 64], sizes = [1, 32], strides = [1, 1]} : vector<1x128xf32> to vector<1x32xf32>
    %cst_43 = arith.constant 1.000000e+00 : f32
    %161 = vector.broadcast %cst_43 : f32 to vector<1x32xf32>
    %162 = arith.subf %161, %159 : vector<1x32xf32>
    %163 = arith.mulf %162, %160 : vector<1x32xf32>
    %164 = arith.mulf %159, %122 : vector<1x32xf32>
    %165 = arith.addf %163, %164 : vector<1x32xf32>
    %166 = arith.mulf %165, %4 : vector<1x32xf32>
    %cst_44 = arith.constant dense<0.000000e+00> : vector<1xf32>
    %167 = vector.multi_reduction <add>, %166, %cst_44 [1] : vector<1x32xf32> to vector<1xf32>
    %168 = vector.shape_cast %167 : vector<1xf32> to vector<1x1xf32>
    %169 = arith.addf %168, %5 : vector<1x1xf32>
    %cst_45 = arith.constant 0.000000e+00 : f32
    %170 = vector.broadcast %cst_45 : f32 to vector<1x1xf32>
    %171 = arith.maximumf %169, %170 : vector<1x1xf32>
    %cst_46 = arith.constant 2.000000e-02 : f32
    %172 = vector.broadcast %cst_46 : f32 to vector<1x1xf32>
    %173 = arith.addf %171, %172 : vector<1x1xf32>
    %174 = arith.mulf %140, %143 : vector<1x1xf32>
    %175 = arith.mulf %174, %173 : vector<1x1xf32>
    %176 = arith.mulf %175, %13 : vector<1x1xf32>
    %cst_47 = arith.constant 5.000000e-02 : f32
    %177 = vector.broadcast %cst_47 : f32 to vector<1x1xf32>
    %178 = arith.mulf %143, %177 : vector<1x1xf32>
    %cst_48 = arith.constant 0.00999999977 : f32
    %179 = vector.broadcast %cst_48 : f32 to vector<1x1xf32>
    %180 = arith.mulf %143, %179 : vector<1x1xf32>
    %181 = arith.addf %138, %178 : vector<1x1xf32>
    %182 = arith.addf %139, %180 : vector<1x1xf32>
    %183 = arith.subf %140, %176 : vector<1x1xf32>
    %184 = arith.addf %143, %176 : vector<1x1xf32>
    %185 = arith.subf %184, %178 : vector<1x1xf32>
    %186 = arith.subf %185, %180 : vector<1x1xf32>
    %cst_49 = arith.constant dense<0.000000e+00> : vector<1x128xf32>
    %187 = tpu.matmul %165, %0, %cst_49 {dimension_numbers = #tpu.dot_dimension_numbers<[1], [0], [0], [1], [0, 0, 1, 1], [], []>} : vector<1x32xf32>, vector<32x128xf32>, vector<1x128xf32> -> vector<1x128xf32>
    %188 = vector.broadcast %173 : vector<1x1xf32> to vector<1x128xf32>
    %189 = arith.mulf %188, %1 : vector<1x128xf32>
    %190 = arith.addf %189, %2 : vector<1x128xf32>
    %191 = arith.addf %190, %187 : vector<1x128xf32>
    %192 = arith.negf %191 : vector<1x128xf32>
    %193 = math.exp %192 : vector<1x128xf32>
    %cst_50 = arith.constant 1.000000e+00 : f32
    %194 = vector.broadcast %cst_50 : f32 to vector<1x128xf32>
    %195 = arith.addf %194, %193 : vector<1x128xf32>
    %196 = arith.divf %194, %195 : vector<1x128xf32>
    %c64_i32_51 = arith.constant 64 : i32
    %197 = tpu.dynamic_rotate %196 by %c64_i32_51 dim 1 : vector<1x128xf32>, i32 -> vector<1x128xf32>
    %198 = arith.addf %187, %3 : vector<1x128xf32>
    %199 = arith.mulf %197, %198 : vector<1x128xf32>
    %200 = arith.addf %190, %199 : vector<1x128xf32>
    %201 = math.tanh %200 : vector<1x128xf32>
    %202 = vector.extract_strided_slice %196 {offsets = [0, 32], sizes = [1, 32], strides = [1, 1]} : vector<1x128xf32> to vector<1x32xf32>
    %203 = vector.extract_strided_slice %201 {offsets = [0, 64], sizes = [1, 32], strides = [1, 1]} : vector<1x128xf32> to vector<1x32xf32>
    %cst_52 = arith.constant 1.000000e+00 : f32
    %204 = vector.broadcast %cst_52 : f32 to vector<1x32xf32>
    %205 = arith.subf %204, %202 : vector<1x32xf32>
    %206 = arith.mulf %205, %203 : vector<1x32xf32>
    %207 = arith.mulf %202, %165 : vector<1x32xf32>
    %208 = arith.addf %206, %207 : vector<1x32xf32>
    %209 = arith.mulf %208, %4 : vector<1x32xf32>
    %cst_53 = arith.constant dense<0.000000e+00> : vector<1xf32>
    %210 = vector.multi_reduction <add>, %209, %cst_53 [1] : vector<1x32xf32> to vector<1xf32>
    %211 = vector.shape_cast %210 : vector<1xf32> to vector<1x1xf32>
    %212 = arith.addf %211, %5 : vector<1x1xf32>
    %cst_54 = arith.constant 0.000000e+00 : f32
    %213 = vector.broadcast %cst_54 : f32 to vector<1x1xf32>
    %214 = arith.maximumf %212, %213 : vector<1x1xf32>
    %cst_55 = arith.constant 2.000000e-02 : f32
    %215 = vector.broadcast %cst_55 : f32 to vector<1x1xf32>
    %216 = arith.addf %214, %215 : vector<1x1xf32>
    %217 = arith.mulf %183, %186 : vector<1x1xf32>
    %218 = arith.mulf %217, %216 : vector<1x1xf32>
    %219 = arith.mulf %218, %13 : vector<1x1xf32>
    %cst_56 = arith.constant 5.000000e-02 : f32
    %220 = vector.broadcast %cst_56 : f32 to vector<1x1xf32>
    %221 = arith.mulf %186, %220 : vector<1x1xf32>
    %cst_57 = arith.constant 0.00999999977 : f32
    %222 = vector.broadcast %cst_57 : f32 to vector<1x1xf32>
    %223 = arith.mulf %186, %222 : vector<1x1xf32>
    %224 = arith.addf %181, %221 : vector<1x1xf32>
    %225 = arith.addf %182, %223 : vector<1x1xf32>
    %226 = arith.subf %183, %219 : vector<1x1xf32>
    %227 = arith.addf %186, %219 : vector<1x1xf32>
    %228 = arith.subf %227, %221 : vector<1x1xf32>
    %229 = arith.subf %228, %223 : vector<1x1xf32>
    %cst_58 = arith.constant dense<0.000000e+00> : vector<1x128xf32>
    %230 = tpu.matmul %208, %0, %cst_58 {dimension_numbers = #tpu.dot_dimension_numbers<[1], [0], [0], [1], [0, 0, 1, 1], [], []>} : vector<1x32xf32>, vector<32x128xf32>, vector<1x128xf32> -> vector<1x128xf32>
    %231 = vector.broadcast %216 : vector<1x1xf32> to vector<1x128xf32>
    %232 = arith.mulf %231, %1 : vector<1x128xf32>
    %233 = arith.addf %232, %2 : vector<1x128xf32>
    %234 = arith.addf %233, %230 : vector<1x128xf32>
    %235 = arith.negf %234 : vector<1x128xf32>
    %236 = math.exp %235 : vector<1x128xf32>
    %cst_59 = arith.constant 1.000000e+00 : f32
    %237 = vector.broadcast %cst_59 : f32 to vector<1x128xf32>
    %238 = arith.addf %237, %236 : vector<1x128xf32>
    %239 = arith.divf %237, %238 : vector<1x128xf32>
    %c64_i32_60 = arith.constant 64 : i32
    %240 = tpu.dynamic_rotate %239 by %c64_i32_60 dim 1 : vector<1x128xf32>, i32 -> vector<1x128xf32>
    %241 = arith.addf %230, %3 : vector<1x128xf32>
    %242 = arith.mulf %240, %241 : vector<1x128xf32>
    %243 = arith.addf %233, %242 : vector<1x128xf32>
    %244 = math.tanh %243 : vector<1x128xf32>
    %245 = vector.extract_strided_slice %239 {offsets = [0, 32], sizes = [1, 32], strides = [1, 1]} : vector<1x128xf32> to vector<1x32xf32>
    %246 = vector.extract_strided_slice %244 {offsets = [0, 64], sizes = [1, 32], strides = [1, 1]} : vector<1x128xf32> to vector<1x32xf32>
    %cst_61 = arith.constant 1.000000e+00 : f32
    %247 = vector.broadcast %cst_61 : f32 to vector<1x32xf32>
    %248 = arith.subf %247, %245 : vector<1x32xf32>
    %249 = arith.mulf %248, %246 : vector<1x32xf32>
    %250 = arith.mulf %245, %208 : vector<1x32xf32>
    %251 = arith.addf %249, %250 : vector<1x32xf32>
    %252 = arith.mulf %251, %4 : vector<1x32xf32>
    %cst_62 = arith.constant dense<0.000000e+00> : vector<1xf32>
    %253 = vector.multi_reduction <add>, %252, %cst_62 [1] : vector<1x32xf32> to vector<1xf32>
    %254 = vector.shape_cast %253 : vector<1xf32> to vector<1x1xf32>
    %255 = arith.addf %254, %5 : vector<1x1xf32>
    %cst_63 = arith.constant 0.000000e+00 : f32
    %256 = vector.broadcast %cst_63 : f32 to vector<1x1xf32>
    %257 = arith.maximumf %255, %256 : vector<1x1xf32>
    %cst_64 = arith.constant 2.000000e-02 : f32
    %258 = vector.broadcast %cst_64 : f32 to vector<1x1xf32>
    %259 = arith.addf %257, %258 : vector<1x1xf32>
    %260 = arith.mulf %226, %229 : vector<1x1xf32>
    %261 = arith.mulf %260, %259 : vector<1x1xf32>
    %262 = arith.mulf %261, %13 : vector<1x1xf32>
    %cst_65 = arith.constant 5.000000e-02 : f32
    %263 = vector.broadcast %cst_65 : f32 to vector<1x1xf32>
    %264 = arith.mulf %229, %263 : vector<1x1xf32>
    %cst_66 = arith.constant 0.00999999977 : f32
    %265 = vector.broadcast %cst_66 : f32 to vector<1x1xf32>
    %266 = arith.mulf %229, %265 : vector<1x1xf32>
    %267 = arith.addf %224, %264 : vector<1x1xf32>
    %268 = arith.addf %225, %266 : vector<1x1xf32>
    %269 = arith.subf %226, %262 : vector<1x1xf32>
    %270 = arith.addf %229, %262 : vector<1x1xf32>
    %271 = arith.subf %270, %264 : vector<1x1xf32>
    %272 = arith.subf %271, %266 : vector<1x1xf32>
    %cst_67 = arith.constant dense<0.000000e+00> : vector<1x128xf32>
    %273 = tpu.matmul %251, %0, %cst_67 {dimension_numbers = #tpu.dot_dimension_numbers<[1], [0], [0], [1], [0, 0, 1, 1], [], []>} : vector<1x32xf32>, vector<32x128xf32>, vector<1x128xf32> -> vector<1x128xf32>
    %274 = vector.broadcast %259 : vector<1x1xf32> to vector<1x128xf32>
    %275 = arith.mulf %274, %1 : vector<1x128xf32>
    %276 = arith.addf %275, %2 : vector<1x128xf32>
    %277 = arith.addf %276, %273 : vector<1x128xf32>
    %278 = arith.negf %277 : vector<1x128xf32>
    %279 = math.exp %278 : vector<1x128xf32>
    %cst_68 = arith.constant 1.000000e+00 : f32
    %280 = vector.broadcast %cst_68 : f32 to vector<1x128xf32>
    %281 = arith.addf %280, %279 : vector<1x128xf32>
    %282 = arith.divf %280, %281 : vector<1x128xf32>
    %c64_i32_69 = arith.constant 64 : i32
    %283 = tpu.dynamic_rotate %282 by %c64_i32_69 dim 1 : vector<1x128xf32>, i32 -> vector<1x128xf32>
    %284 = arith.addf %273, %3 : vector<1x128xf32>
    %285 = arith.mulf %283, %284 : vector<1x128xf32>
    %286 = arith.addf %276, %285 : vector<1x128xf32>
    %287 = math.tanh %286 : vector<1x128xf32>
    %288 = vector.extract_strided_slice %282 {offsets = [0, 32], sizes = [1, 32], strides = [1, 1]} : vector<1x128xf32> to vector<1x32xf32>
    %289 = vector.extract_strided_slice %287 {offsets = [0, 64], sizes = [1, 32], strides = [1, 1]} : vector<1x128xf32> to vector<1x32xf32>
    %cst_70 = arith.constant 1.000000e+00 : f32
    %290 = vector.broadcast %cst_70 : f32 to vector<1x32xf32>
    %291 = arith.subf %290, %288 : vector<1x32xf32>
    %292 = arith.mulf %291, %289 : vector<1x32xf32>
    %293 = arith.mulf %288, %251 : vector<1x32xf32>
    %294 = arith.addf %292, %293 : vector<1x32xf32>
    %295 = arith.mulf %294, %4 : vector<1x32xf32>
    %cst_71 = arith.constant dense<0.000000e+00> : vector<1xf32>
    %296 = vector.multi_reduction <add>, %295, %cst_71 [1] : vector<1x32xf32> to vector<1xf32>
    %297 = vector.shape_cast %296 : vector<1xf32> to vector<1x1xf32>
    %298 = arith.addf %297, %5 : vector<1x1xf32>
    %cst_72 = arith.constant 0.000000e+00 : f32
    %299 = vector.broadcast %cst_72 : f32 to vector<1x1xf32>
    %300 = arith.maximumf %298, %299 : vector<1x1xf32>
    %cst_73 = arith.constant 2.000000e-02 : f32
    %301 = vector.broadcast %cst_73 : f32 to vector<1x1xf32>
    %302 = arith.addf %300, %301 : vector<1x1xf32>
    %303 = arith.mulf %269, %272 : vector<1x1xf32>
    %304 = arith.mulf %303, %302 : vector<1x1xf32>
    %305 = arith.mulf %304, %13 : vector<1x1xf32>
    %cst_74 = arith.constant 5.000000e-02 : f32
    %306 = vector.broadcast %cst_74 : f32 to vector<1x1xf32>
    %307 = arith.mulf %272, %306 : vector<1x1xf32>
    %cst_75 = arith.constant 0.00999999977 : f32
    %308 = vector.broadcast %cst_75 : f32 to vector<1x1xf32>
    %309 = arith.mulf %272, %308 : vector<1x1xf32>
    %310 = arith.addf %267, %307 : vector<1x1xf32>
    %311 = arith.addf %268, %309 : vector<1x1xf32>
    %312 = arith.subf %269, %305 : vector<1x1xf32>
    %313 = arith.addf %272, %305 : vector<1x1xf32>
    %314 = arith.subf %313, %307 : vector<1x1xf32>
    %315 = arith.subf %314, %309 : vector<1x1xf32>
    %cst_76 = arith.constant dense<0.000000e+00> : vector<1x128xf32>
    %316 = tpu.matmul %294, %0, %cst_76 {dimension_numbers = #tpu.dot_dimension_numbers<[1], [0], [0], [1], [0, 0, 1, 1], [], []>} : vector<1x32xf32>, vector<32x128xf32>, vector<1x128xf32> -> vector<1x128xf32>
    %317 = vector.broadcast %302 : vector<1x1xf32> to vector<1x128xf32>
    %318 = arith.mulf %317, %1 : vector<1x128xf32>
    %319 = arith.addf %318, %2 : vector<1x128xf32>
    %320 = arith.addf %319, %316 : vector<1x128xf32>
    %321 = arith.negf %320 : vector<1x128xf32>
    %322 = math.exp %321 : vector<1x128xf32>
    %cst_77 = arith.constant 1.000000e+00 : f32
    %323 = vector.broadcast %cst_77 : f32 to vector<1x128xf32>
    %324 = arith.addf %323, %322 : vector<1x128xf32>
    %325 = arith.divf %323, %324 : vector<1x128xf32>
    %c64_i32_78 = arith.constant 64 : i32
    %326 = tpu.dynamic_rotate %325 by %c64_i32_78 dim 1 : vector<1x128xf32>, i32 -> vector<1x128xf32>
    %327 = arith.addf %316, %3 : vector<1x128xf32>
    %328 = arith.mulf %326, %327 : vector<1x128xf32>
    %329 = arith.addf %319, %328 : vector<1x128xf32>
    %330 = math.tanh %329 : vector<1x128xf32>
    %331 = vector.extract_strided_slice %325 {offsets = [0, 32], sizes = [1, 32], strides = [1, 1]} : vector<1x128xf32> to vector<1x32xf32>
    %332 = vector.extract_strided_slice %330 {offsets = [0, 64], sizes = [1, 32], strides = [1, 1]} : vector<1x128xf32> to vector<1x32xf32>
    %cst_79 = arith.constant 1.000000e+00 : f32
    %333 = vector.broadcast %cst_79 : f32 to vector<1x32xf32>
    %334 = arith.subf %333, %331 : vector<1x32xf32>
    %335 = arith.mulf %334, %332 : vector<1x32xf32>
    %336 = arith.mulf %331, %294 : vector<1x32xf32>
    %337 = arith.addf %335, %336 : vector<1x32xf32>
    %338 = arith.mulf %337, %4 : vector<1x32xf32>
    %cst_80 = arith.constant dense<0.000000e+00> : vector<1xf32>
    %339 = vector.multi_reduction <add>, %338, %cst_80 [1] : vector<1x32xf32> to vector<1xf32>
    %340 = vector.shape_cast %339 : vector<1xf32> to vector<1x1xf32>
    %341 = arith.addf %340, %5 : vector<1x1xf32>
    %cst_81 = arith.constant 0.000000e+00 : f32
    %342 = vector.broadcast %cst_81 : f32 to vector<1x1xf32>
    %343 = arith.maximumf %341, %342 : vector<1x1xf32>
    %cst_82 = arith.constant 2.000000e-02 : f32
    %344 = vector.broadcast %cst_82 : f32 to vector<1x1xf32>
    %345 = arith.addf %343, %344 : vector<1x1xf32>
    %346 = arith.mulf %312, %315 : vector<1x1xf32>
    %347 = arith.mulf %346, %345 : vector<1x1xf32>
    %348 = arith.mulf %347, %13 : vector<1x1xf32>
    %cst_83 = arith.constant 5.000000e-02 : f32
    %349 = vector.broadcast %cst_83 : f32 to vector<1x1xf32>
    %350 = arith.mulf %315, %349 : vector<1x1xf32>
    %cst_84 = arith.constant 0.00999999977 : f32
    %351 = vector.broadcast %cst_84 : f32 to vector<1x1xf32>
    %352 = arith.mulf %315, %351 : vector<1x1xf32>
    %353 = arith.addf %310, %350 : vector<1x1xf32>
    %354 = arith.addf %311, %352 : vector<1x1xf32>
    %355 = arith.subf %312, %348 : vector<1x1xf32>
    %356 = arith.addf %315, %348 : vector<1x1xf32>
    %357 = arith.subf %356, %350 : vector<1x1xf32>
    %358 = arith.subf %357, %352 : vector<1x1xf32>
    %359 = tpu.concatenate %355, %358, %353, %354, %11 in 1 : vector<1x1xf32>, vector<1x1xf32>, vector<1x1xf32>, vector<1x1xf32>, vector<1x1xf32> -> vector<1x5xf32>
    %c0_85 = arith.constant 0 : index
    %c0_86 = arith.constant 0 : index
    %360 = vector.load %arg1[%c0_85, %c0_86] : memref<1x5xf32, #tpu.memory_space<vmem>>, vector<1x5xf32>
    tpu.vector_store %arg1[%c0_85, %c0_86], %359 {strides = array<i32>} : memref<1x5xf32, #tpu.memory_space<vmem>>, vector<1x5xf32>,
    return
  }
}

</mosaic_0001>

<bundles_post_ra>
// kernel: tpu_custom_call.1
= control target key start
LH: loop header
LB: loop body
LE: loop exit
PB: predicated region body
PF: predicated region fallthrough
CT: control target
= control target key end

     0   :  { %6 = vsyncpa [#allocation3], 0  ;;  %s1308_s0 = inlined_call_operand.hbm [shape: f32[40,128], index: 0, kind: input, shape index: {}]   ;;  %s1309_s1 = inlined_call_operand.hbm [shape: f32[1,5], index: 1, kind: output, shape index: {}]  }
   0x1   :  { %7 = vsyncpa [#allocation4], 0  ;;  %s12_s8 = sshll.u32 %s1308_s0, 4  ;;  %s1053_s9 = smov [#allocation2]   ;;  %s13_s8 = int_to_ptr.hbm [resolvable:$true] %s12_s8 }
   0x2   :  { %s14_s10 = sshll.u32 %s1053_s9, 4  ;;  %s1054_s11 = smov 128   ;;  %s15_s10 = int_to_ptr.vmem [resolvable:$true] %s14_s10 }
   0x3   :  { %s1055_s12 = smov 8  }
   0x4   :  { %20 = dma.hbm_to_vmem [thread:$0]  %s13_s8, 640, %s15_s10, [#allocation3], %s1054_s11, %s1054_s11, %s1055_s12  }
   0x5   :  { %1049 = dma.done.wait [#allocation3], 640  }
   0x6   :  { %1050 = vsyncadd [#allocation3], 4294966656  ;;  %v1056_v0 = vmov 1   ;;  %v28_v1 = vld [vmem:[#allocation2 + $0x18] sm:$0xff]  ;;  %v27_v2 = vld [vmem:[#allocation2 + $0x10] sm:$0xff]  ;;  %v1057_v6 = vmov 0.0  }
   0x7   :  { %946 = vset.pattern.permute.xlu0 %v1056_v0  ;;  %66 = vmatpush.msra.mxu0 %v28_v1  ;;  %v1080_v3 = vld [vmem:[#allocation2 + $0x24] sm:$0x1]  ;;  %v26_v4 = vld [vmem:[#allocation2 + $0x8] sm:$0xff]  ;;  %v1083_v8 = vld [vmem:[#allocation2 + $0x20] sm:$0x1]  ;;  %s1058_s0 = smov 64  }
   0x8   :  { %179 = vmatpush.msra.mxu1 %v28_v1  ;;  %76 = vperm.xlu0 %946, %v1080_v3   ;;  %v25_v5 = vld [vmem:[#allocation2] sm:$0xff]  ;;  %s1059_s13 = smov 96   ;;  %s1060_s14 = smov 32   ;;  %vm50_vm4 = vcmask 261120   ;;  %vm124_vm5 = vcmask 253952   ;;  %v1061_v44 = vmov 0  }
   0x9   :  { %283 = vmatpush.msra.mxu2 %v28_v1  ;;  %67 = vmatpush.msra.mxu0 %v27_v2  ;;  %v1086_v10 = vld [vmem:[#allocation2 + $0x21] sm:$0x1]  ;;  %v1090_v27 = vld [vmem:[#allocation2 + $0x22] sm:$0x1]  ;;  %v32_v33 = vld [vmem:[#allocation2 + $0x23] sm:$0x1] }
   0xa   :  { %180 = vmatpush.msra.mxu1 %v27_v2  ;;  %387 = vmatpush.msra.mxu3 %v28_v1  ;;  %s1062_s15 = smov 124   ;;  %s1063_s16 = smov 127  }
   0xb   :  { %284 = vmatpush.msra.mxu2 %v27_v2  ;;  %68 = vmatpush.msra.mxu0 %v26_v4  ;;  %s1064_s17 = smov 1   ;;  %s1065_s18 = smov 2  }
   0xc   :  { %181 = vmatpush.msra.mxu1 %v26_v4  ;;  %388 = vmatpush.msra.mxu3 %v27_v2  ;;  %s1066_s19 = smov [#allocation5]   ;;  %s907_s23 = sshll.u32 %s1309_s1, 4  ;;  %s908_s23 = int_to_ptr.hbm [resolvable:$true] %s907_s23 }
   0xd   :  { %285 = vmatpush.msra.mxu2 %v26_v4  ;;  %69 = vmatpush.msra.mxu0 %v25_v5  ;;  %s905_s20 = sshll.u32 %s1066_s19, 4  ;;  %s906_s20 = int_to_ptr.vmem [resolvable:$true] %s905_s20 }
   0xe   :  { %182 = vmatpush.msra.mxu1 %v25_v5  ;;  %70 = vmatmul.f32.vlgmr.msra.gmra.mxu0 %v1057_v6 }
   0xf   :  { %286 = vmatpush.msra.mxu2 %v25_v5  ;;  %389 = vmatpush.msra.mxu3 %v26_v4 }
  0x10   :  { %491 = vmatpush.msrb.mxu0 %v28_v1  ;;  %595 = vmatpush.msrb.mxu1 %v28_v1 }
  0x11   :  { %699 = vmatpush.msrb.mxu2 %v28_v1  ;;  %390 = vmatpush.msra.mxu3 %v25_v5 }
  0x12   :  { %492 = vmatpush.msrb.mxu0 %v27_v2  ;;  %596 = vmatpush.msrb.mxu1 %v27_v2 }
  0x13   :  { %700 = vmatpush.msrb.mxu2 %v27_v2  ;;  %803 = vmatpush.msrb.mxu3 %v28_v1 }
  0x14   :  { %493 = vmatpush.msrb.mxu0 %v26_v4  ;;  %597 = vmatpush.msrb.mxu1 %v26_v4 }
  0x15   :  { %701 = vmatpush.msrb.mxu2 %v26_v4  ;;  %804 = vmatpush.msrb.mxu3 %v27_v2 }
  0x16   :  { %494 = vmatpush.msrb.mxu0 %v25_v5  ;;  %598 = vmatpush.msrb.mxu1 %v25_v5 }
  0x17   :  { %702 = vmatpush.msrb.mxu2 %v25_v5  ;;  %805 = vmatpush.msrb.mxu3 %v26_v4 }
  0x18   :  { %947 = vset.pattern.permute.xlu1 %v1061_v44  ;;  %948 = vset.pattern.permute.xlu2 %v1061_v44 }
  0x19   :  { %806 = vmatpush.msrb.mxu3 %v25_v5  ;;  %949 = vset.pattern.permute.xlu0 %v1061_v44 }
  0x7a   :  { %v77_v7 = vpop.permute.xlu0 %76 }
  0x7b   :  { %v79_v9 = vmul.f32 %v77_v7, %v1083_v8 }
  0x7d   :  { %v80_v11 = vadd.f32 %v79_v9, %v1086_v10 }
  0x8b   :  { %v71_v12 = vpop.f32.mrf.mxu0 }
  0x8c   :  { %v81_v13 = vadd.f32 %v80_v11, %v71_v12  ;;  %v103_v28 = vadd.f32 %v71_v12, %v1090_v27 }
  0x8e   :  { %v917_v14 = vmul.f32 -1.442695, %v81_v13 }
  0x90   :  { %950 = vpow2.f32 %v917_v14 }
  0x96   :  { %v951_v15 = vpop.eup %950 }
  0x97   :  { %v85_v16 = vadd.f32 1.0, %v951_v15 }
  0x99   :  { %952 = vrcp.f32 %v85_v16  ;;  %v97_v20 = vand.u32 2147483648, %v85_v16  ;;  %v95_v22 = vand.u32 2147483647, %v85_v16  ;;  %vm91_vm1 = vweird.f32 %v85_v16 }
  0x9b   :  { %v98_v24 = vor.u32 1.1754944e-38, %v97_v20  ;;  %vm96_vm3 = vcmp.eq.f32.partialorder %v95_v22, 8.507059e+37 }
  0x9f   :  { %v953_v17 = vpop.eup %952 }
  0xa0   :  { %v87_v18 = vmul.f32 %v953_v17, %v85_v16  ;;  %vm92_vm0 = vweird.f32 %v953_v17 }
  0xa1   :  { %vm93_vm2 = vmor %vm91_vm1, %vm92_vm0 }
  0xa2   :  { %v88_v19 = vsub.f32 1.0, %v87_v18 }
  0xa4   :  { %v89_v21 = vmul.f32 %v953_v17, %v88_v19 }
  0xa6   :  { %v90_v23 = vadd.f32 %v953_v17, %v89_v21 }
  0xa8   :  { %v94_v25 = vsel %vm93_vm2, %v953_v17, %v90_v23 }
  0xa9   :  { %v99_v26 = vsel %vm96_vm3, %v98_v24, %v94_v25 }
  0xaa   :  { %101 = vrot.lane.b32.xlu0 %v99_v26, %s1058_s0  ;;  %v107_v34 = vsub.f32 1.0, %v99_v26  ;;  %v113_v36 = vmul.f32 0.0, %v99_v26 }
 0x11c   :  { %v102_v29 = vpop.permute.xlu0 %101 }
 0x11d   :  { %v104_v30 = vmul.f32 %v103_v28, %v102_v29 }
 0x11f   :  { %v105_v31 = vadd.f32 %v104_v30, %v80_v11 }
 0x121   :  { %954 = vtanh.f32 %v105_v31 }
 0x127   :  { %v955_v32 = vpop.eup %954 }
 0x128   :  { %109 = vrot.lane.b32.xlu1 %v955_v32, %s1059_s13 }
 0x130   :  { %116 = vrot.lane.b32.xlu1 %v32_v33, %s1060_s14 }
 0x19a   :  { %v110_v35 = vpop.permute.xlu1 %109 }
 0x19b   :  { %v112_v37 = vmul.f32 %v110_v35, %v107_v34 }
 0x19d   :  { %v114_v38 = vadd.f32 %v113_v36, %v112_v37 }
 0x19f   :  { %163 = vrot.lane.b32.xlu2 %v114_v38, %s1059_s13 }
 0x1a2   :  { %v1095_v39 = vpop.permute.xlu1 %116 }
 0x1a3   :  { %v119_v40 = vmul.f32 %v1095_v39, %v114_v38 }
 0x1a7   :  { %121 = vrot.lane.b32.xlu2 %v119_v40, %s1059_s13 }
 0x1f9   :  { %v164_v41 = vpop.permute.xlu2 %163 }
 0x1fa   :  { %918 = vmatmul.msk.f32.vlgmr.msra.gmra.mxu1 %vm50_vm4, %v164_v41 }
 0x201   :  { %v122_v42 = vpop.permute.xlu2 %121 }
 0x202   :  { %v125_v43 = vsel %vm124_vm5, %v122_v42, 0.0 }
 0x203   :  { %126 = vadd.xlane.f32.xlu0 %v125_v43 }
 0x276   :  { %v127_v45 = vpop.xlane.xlu0 %126 }
 0x277   :  { %v128_v46 = vadd.f32 %v127_v45, %v1080_v3  ;;  %v184_v52 = vpop.f32.mrf.mxu1 }
 0x278   :  { %v216_v4 = vadd.f32 %v184_v52, %v1090_v27 }
 0x279   :  { %v129_v47 = vmax.f32 %v128_v46, 0.0 }
 0x27b   :  { %v1102_v48 = vadd.f32 0.02, %v129_v47 }
 0x27d   :  { %189 = vperm.xlu1 %947, %v1102_v48  }
 0x2ef   :  { %v190_v49 = vpop.permute.xlu1 %189 }
 0x2f0   :  { %v192_v50 = vmul.f32 %v190_v49, %v1083_v8 }
 0x2f2   :  { %v193_v51 = vadd.f32 %v192_v50, %v1086_v10 }
 0x2f4   :  { %v194_v53 = vadd.f32 %v193_v51, %v184_v52 }
 0x2f6   :  { %v919_v54 = vmul.f32 -1.442695, %v194_v53 }
 0x2f8   :  { %956 = vpow2.f32 %v919_v54 }
 0x2fe   :  { %v957_v55 = vpop.eup %956 }
 0x2ff   :  { %v198_v56 = vadd.f32 1.0, %v957_v55 }
 0x301   :  { %958 = vrcp.f32 %v198_v56  ;;  %v210_v60 = vand.u32 2147483648, %v198_v56  ;;  %v208_v62 = vand.u32 2147483647, %v198_v56  ;;  %vm204_vm7 = vweird.f32 %v198_v56 }
 0x303   :  { %v211_v0 = vor.u32 1.1754944e-38, %v210_v60  ;;  %vm209_vm9 = vcmp.eq.f32.partialorder %v208_v62, 8.507059e+37 }
 0x307   :  { %v959_v57 = vpop.eup %958 }
 0x308   :  { %v200_v58 = vmul.f32 %v959_v57, %v198_v56  ;;  %vm205_vm6 = vweird.f32 %v959_v57 }
 0x309   :  { %vm206_vm8 = vmor %vm204_vm7, %vm205_vm6 }
 0x30a   :  { %v201_v59 = vsub.f32 1.0, %v200_v58 }
 0x30c   :  { %v202_v61 = vmul.f32 %v959_v57, %v201_v59 }
 0x30e   :  { %v203_v63 = vadd.f32 %v959_v57, %v202_v61 }
 0x310   :  { %v207_v1 = vsel %vm206_vm8, %v959_v57, %v203_v63 }
 0x311   :  { %v212_v2 = vsel %vm209_vm9, %v211_v0, %v207_v1 }
 0x312   :  { %214 = vrot.lane.b32.xlu2 %v212_v2, %s1058_s0  ;;  %v220_v11 = vsub.f32 1.0, %v212_v2  ;;  %v226_v13 = vmul.f32 %v212_v2, %v114_v38 }
 0x36c   :  { %v215_v5 = vpop.permute.xlu2 %214 }
 0x36d   :  { %v217_v6 = vmul.f32 %v216_v4, %v215_v5 }
 0x36f   :  { %v218_v7 = vadd.f32 %v217_v6, %v193_v51 }
 0x371   :  { %960 = vtanh.f32 %v218_v7 }
 0x377   :  { %v961_v9 = vpop.eup %960 }
 0x378   :  { %222 = vrot.lane.b32.xlu1 %v961_v9, %s1059_s13 }
 0x3ea   :  { %v223_v12 = vpop.permute.xlu1 %222 }
 0x3eb   :  { %v225_v14 = vmul.f32 %v223_v12, %v220_v11 }
 0x3ed   :  { %v227_v15 = vadd.f32 %v226_v13, %v225_v14 }
 0x3ef   :  { %267 = vrot.lane.b32.xlu2 %v227_v15, %s1059_s13  ;;  %v228_v16 = vmul.f32 %v227_v15, %v1095_v39 }
 0x3f1   :  { %230 = vrot.lane.b32.xlu1 %v228_v16, %s1059_s13 }
 0x449   :  { %v268_v17 = vpop.permute.xlu2 %267 }
 0x44a   :  { %920 = vmatmul.msk.f32.vlgmr.msra.gmra.mxu2 %vm50_vm4, %v268_v17 }
 0x463   :  { %v231_v18 = vpop.permute.xlu1 %230 }
 0x464   :  { %v233_v19 = vsel %vm124_vm5, %v231_v18, 0.0 }
 0x465   :  { %234 = vadd.xlane.f32.xlu2 %v233_v19 }
 0x4cd   :  { %v288_v28 = vpop.f32.mrf.mxu2 }
 0x4ce   :  { %v320_v44 = vadd.f32 %v288_v28, %v1090_v27 }
 0x4d8   :  { %v235_v20 = vpop.xlane.xlu2 %234 }
 0x4d9   :  { %v236_v21 = vadd.f32 %v235_v20, %v1080_v3 }
 0x4db   :  { %v237_v22 = vmax.f32 %v236_v21, 0.0 }
 0x4dd   :  { %v1116_v23 = vadd.f32 0.02, %v237_v22 }
 0x4df   :  { %293 = vperm.xlu1 %947, %v1116_v23  }
 0x551   :  { %v294_v24 = vpop.permute.xlu1 %293 }
 0x552   :  { %v296_v25 = vmul.f32 %v294_v24, %v1083_v8 }
 0x554   :  { %v297_v26 = vadd.f32 %v296_v25, %v1086_v10 }
 0x556   :  { %v298_v29 = vadd.f32 %v297_v26, %v288_v28 }
 0x558   :  { %v921_v30 = vmul.f32 -1.442695, %v298_v29 }
 0x55a   :  { %962 = vpow2.f32 %v921_v30 }
 0x560   :  { %v963_v31 = vpop.eup %962 }
 0x561   :  { %v302_v32 = vadd.f32 1.0, %v963_v31 }
 0x563   :  { %964 = vrcp.f32 %v302_v32  ;;  %v314_v36 = vand.u32 2147483648, %v302_v32  ;;  %v312_v38 = vand.u32 2147483647, %v302_v32  ;;  %vm308_vm11 = vweird.f32 %v302_v32 }
 0x565   :  { %v315_v41 = vor.u32 1.1754944e-38, %v314_v36  ;;  %vm313_vm13 = vcmp.eq.f32.partialorder %v312_v38, 8.507059e+37 }
 0x569   :  { %v965_v33 = vpop.eup %964 }
 0x56a   :  { %v304_v34 = vmul.f32 %v965_v33, %v302_v32  ;;  %vm309_vm10 = vweird.f32 %v965_v33 }
 0x56b   :  { %vm310_vm12 = vmor %vm308_vm11, %vm309_vm10 }
 0x56c   :  { %v305_v35 = vsub.f32 1.0, %v304_v34 }
 0x56e   :  { %v306_v37 = vmul.f32 %v965_v33, %v305_v35 }
 0x570   :  { %v307_v40 = vadd.f32 %v965_v33, %v306_v37 }
 0x572   :  { %v311_v42 = vsel %vm310_vm12, %v965_v33, %v307_v40 }
 0x573   :  { %v316_v43 = vsel %vm313_vm13, %v315_v41, %v311_v42 }
 0x574   :  { %318 = vrot.lane.b32.xlu1 %v316_v43, %s1058_s0  ;;  %v324_v50 = vsub.f32 1.0, %v316_v43  ;;  %v330_v52 = vmul.f32 %v316_v43, %v227_v15 }
 0x5e6   :  { %v319_v45 = vpop.permute.xlu1 %318 }
 0x5e7   :  { %v321_v46 = vmul.f32 %v320_v44, %v319_v45 }
 0x5e9   :  { %v322_v47 = vadd.f32 %v321_v46, %v297_v26 }
 0x5eb   :  { %966 = vtanh.f32 %v322_v47 }
 0x5f1   :  { %v967_v49 = vpop.eup %966 }
 0x5f2   :  { %326 = vrot.lane.b32.xlu1 %v967_v49, %s1059_s13 }
 0x664   :  { %v327_v51 = vpop.permute.xlu1 %326 }
 0x665   :  { %v329_v53 = vmul.f32 %v327_v51, %v324_v50 }
 0x667   :  { %v331_v54 = vadd.f32 %v330_v52, %v329_v53 }
 0x669   :  { %371 = vrot.lane.b32.xlu0 %v331_v54, %s1059_s13  ;;  %v332_v55 = vmul.f32 %v331_v54, %v1095_v39 }
 0x66b   :  { %334 = vrot.lane.b32.xlu1 %v332_v55, %s1059_s13 }
 0x6db   :  { %v372_v56 = vpop.permute.xlu0 %371 }
 0x6dc   :  { %922 = vmatmul.msk.f32.vlgmr.msra.gmra.mxu3 %vm50_vm4, %v372_v56 }
 0x6dd   :  { %v335_v57 = vpop.permute.xlu1 %334 }
 0x6de   :  { %v337_v58 = vsel %vm124_vm5, %v335_v57, 0.0 }
 0x6df   :  { %338 = vadd.xlane.f32.xlu1 %v337_v58 }
 0x752   :  { %v339_v59 = vpop.xlane.xlu1 %338 }
 0x753   :  { %v340_v60 = vadd.f32 %v339_v59, %v1080_v3 }
 0x755   :  { %v341_v61 = vmax.f32 %v340_v60, 0.0 }
 0x757   :  { %v1130_v62 = vadd.f32 0.02, %v341_v61 }
 0x759   :  { %397 = vperm.xlu2 %948, %v1130_v62  }
 0x75f   :  { %v392_v2 = vpop.f32.mrf.mxu3 }
 0x760   :  { %v424_v20 = vadd.f32 %v392_v2, %v1090_v27 }
 0x7b3   :  { %v398_v63 = vpop.permute.xlu2 %397 }
 0x7b4   :  { %v400_v0 = vmul.f32 %v398_v63, %v1083_v8 }
 0x7b6   :  { %v401_v1 = vadd.f32 %v400_v0, %v1086_v10 }
 0x7b8   :  { %v402_v4 = vadd.f32 %v401_v1, %v392_v2 }
 0x7ba   :  { %v923_v5 = vmul.f32 -1.442695, %v402_v4 }
 0x7bc   :  { %968 = vpow2.f32 %v923_v5 }
 0x7c2   :  { %v969_v6 = vpop.eup %968 }
 0x7c3   :  { %v406_v7 = vadd.f32 1.0, %v969_v6 }
 0x7c5   :  { %970 = vrcp.f32 %v406_v7  ;;  %v418_v13 = vand.u32 2147483648, %v406_v7  ;;  %v416_v15 = vand.u32 2147483647, %v406_v7  ;;  %vm412_vm15 = vweird.f32 %v406_v7 }
 0x7c7   :  { %v419_v17 = vor.u32 1.1754944e-38, %v418_v13  ;;  %vm417_vm1 = vcmp.eq.f32.partialorder %v416_v15, 8.507059e+37 }
 0x7cb   :  { %v971_v9 = vpop.eup %970 }
 0x7cc   :  { %v408_v11 = vmul.f32 %v971_v9, %v406_v7  ;;  %vm413_vm14 = vweird.f32 %v971_v9 }
 0x7cd   :  { %vm414_vm0 = vmor %vm412_vm15, %vm413_vm14 }
 0x7ce   :  { %v409_v12 = vsub.f32 1.0, %v408_v11 }
 0x7d0   :  { %v410_v14 = vmul.f32 %v971_v9, %v409_v12 }
 0x7d2   :  { %v411_v16 = vadd.f32 %v971_v9, %v410_v14 }
 0x7d4   :  { %v415_v18 = vsel %vm414_vm0, %v971_v9, %v411_v16 }
 0x7d5   :  { %v420_v19 = vsel %vm417_vm1, %v419_v17, %v415_v18 }
 0x7d6   :  { %422 = vrot.lane.b32.xlu0 %v420_v19, %s1058_s0  ;;  %v428_v26 = vsub.f32 1.0, %v420_v19  ;;  %v434_v29 = vmul.f32 %v420_v19, %v331_v54 }
 0x848   :  { %v423_v21 = vpop.permute.xlu0 %422 }
 0x849   :  { %v425_v22 = vmul.f32 %v424_v20, %v423_v21 }
 0x84b   :  { %v426_v24 = vadd.f32 %v425_v22, %v401_v1 }
 0x84d   :  { %972 = vtanh.f32 %v426_v24 }
 0x853   :  { %v973_v25 = vpop.eup %972 }
 0x854   :  { %430 = vrot.lane.b32.xlu0 %v973_v25, %s1059_s13 }
 0x8c6   :  { %v431_v28 = vpop.permute.xlu0 %430 }
 0x8c7   :  { %v433_v30 = vmul.f32 %v431_v28, %v428_v26 }
 0x8c9   :  { %v435_v31 = vadd.f32 %v434_v29, %v433_v30 }
 0x8cb   :  { %475 = vrot.lane.b32.xlu0 %v435_v31, %s1059_s13  ;;  %v436_v32 = vmul.f32 %v435_v31, %v1095_v39 }
 0x8cd   :  { %438 = vrot.lane.b32.xlu2 %v436_v32, %s1059_s13 }
 0x927   :  { %v439_v33 = vpop.permute.xlu2 %438 }
 0x928   :  { %v441_v34 = vsel %vm124_vm5, %v439_v33, 0.0 }
 0x929   :  { %442 = vadd.xlane.f32.xlu0 %v441_v34 }
 0x93d   :  { %v476_v35 = vpop.permute.xlu0 %475 }
 0x93e   :  { %924 = vmatmul.msk.f32.vlgmr.msrb.gmra.mxu0 %vm50_vm4, %v476_v35 }
 0x99c   :  { %v443_v36 = vpop.xlane.xlu0 %442 }
 0x99d   :  { %v444_v37 = vadd.f32 %v443_v36, %v1080_v3 }
 0x99f   :  { %v445_v38 = vmax.f32 %v444_v37, 0.0 }
 0x9a1   :  { %v1144_v40 = vadd.f32 0.02, %v445_v38 }
 0x9a3   :  { %501 = vperm.xlu2 %948, %v1144_v40  }
 0x9bb   :  { %v496_v44 = vpop.f32.mrf.mxu0 }
 0x9bc   :  { %v528_v60 = vadd.f32 %v496_v44, %v1090_v27 }
 0x9fd   :  { %v502_v41 = vpop.permute.xlu2 %501 }
 0x9fe   :  { %v504_v42 = vmul.f32 %v502_v41, %v1083_v8 }
 0xa00   :  { %v505_v43 = vadd.f32 %v504_v42, %v1086_v10 }
 0xa02   :  { %v506_v45 = vadd.f32 %v505_v43, %v496_v44 }
 0xa04   :  { %v925_v46 = vmul.f32 -1.442695, %v506_v45  ;;  %v1170_v45 = vld [vmem:[#allocation2 + $0x25] sm:$0x1] }
 0xa05   :  { %vm40_vm12 = vweird.f32 %v1170_v45 }
 0xa06   :  { %974 = vpow2.f32 %v925_v46 }
 0xa0c   :  { %v975_v47 = vpop.eup %974 }
 0xa0d   :  { %v510_v49 = vadd.f32 1.0, %v975_v47 }
 0xa0f   :  { %976 = vrcp.f32 %v510_v49  ;;  %v522_v53 = vand.u32 2147483648, %v510_v49  ;;  %v520_v55 = vand.u32 2147483647, %v510_v49  ;;  %vm516_vm3 = vweird.f32 %v510_v49 }
 0xa11   :  { %v523_v57 = vor.u32 1.1754944e-38, %v522_v53  ;;  %vm521_vm7 = vcmp.eq.f32.partialorder %v520_v55, 8.507059e+37  ;;  %v44_v53 = vand.u32 2147483647, %v1170_v45 }
 0xa13   :  { %vm45_vm15 = vcmp.eq.f32.partialorder %v44_v53, 8.507059e+37 }
 0xa15   :  { %v977_v50 = vpop.eup %976 }
 0xa16   :  { %v512_v51 = vmul.f32 %v977_v50, %v510_v49  ;;  %vm517_vm2 = vweird.f32 %v977_v50 }
 0xa17   :  { %vm518_vm6 = vmor %vm516_vm3, %vm517_vm2 }
 0xa18   :  { %v513_v52 = vsub.f32 1.0, %v512_v51  ;;  %v46_v51 = vand.u32 2147483648, %v1170_v45 }
 0xa1a   :  { %v514_v54 = vmul.f32 %v977_v50, %v513_v52 }
 0xa1c   :  { %v515_v56 = vadd.f32 %v977_v50, %v514_v54  ;;  %v47_v54 = vor.u32 1.1754944e-38, %v46_v51 }
 0xa1e   :  { %v519_v58 = vsel %vm518_vm6, %v977_v50, %v515_v56 }
 0xa1f   :  { %v524_v59 = vsel %vm521_vm7, %v523_v57, %v519_v58 }
 0xa20   :  { %526 = vrot.lane.b32.xlu2 %v524_v59, %s1058_s0  ;;  %v532_v2 = vsub.f32 1.0, %v524_v59  ;;  %v538_v5 = vmul.f32 %v524_v59, %v435_v31 }
 0xa7a   :  { %v527_v61 = vpop.permute.xlu2 %526 }
 0xa7b   :  { %v529_v63 = vmul.f32 %v528_v60, %v527_v61 }
 0xa7d   :  { %v530_v0 = vadd.f32 %v529_v63, %v505_v43 }
 0xa7f   :  { %978 = vtanh.f32 %v530_v0 }
 0xa85   :  { %v979_v1 = vpop.eup %978 }
 0xa86   :  { %534 = vrot.lane.b32.xlu1 %v979_v1, %s1059_s13 }
 0xaf8   :  { %v535_v4 = vpop.permute.xlu1 %534 }
 0xaf9   :  { %v537_v6 = vmul.f32 %v535_v4, %v532_v2 }
 0xafb   :  { %v1152_v7 = vadd.f32 %v538_v5, %v537_v6 }
 0xafd   :  { %579 = vrot.lane.b32.xlu2 %v1152_v7, %s1059_s13  ;;  %v540_v9 = vmul.f32 %v1152_v7, %v1095_v39 }
 0xb05   :  { %542 = vrot.lane.b32.xlu2 %v540_v9, %s1059_s13 }
 0xb57   :  { %v580_v11 = vpop.permute.xlu2 %579 }
 0xb58   :  { %926 = vmatmul.msk.f32.vlgmr.msrb.gmra.mxu1 %vm50_vm4, %v580_v11  ;;  %v1196_v11 = vmul.f32 0.05, %v1170_v45 }
 0xb5f   :  { %v543_v12 = vpop.permute.xlu2 %542 }
 0xb60   :  { %v545_v13 = vsel %vm124_vm5, %v543_v12, 0.0 }
 0xb61   :  { %546 = vadd.xlane.f32.xlu2 %v545_v13  ;;  %v1199_v13 = vmul.f32 0.01, %v1170_v45 }
 0xbd4   :  { %v547_v14 = vpop.xlane.xlu2 %546 }
 0xbd5   :  { %v548_v15 = vadd.f32 %v547_v14, %v1080_v3  ;;  %v600_v21 = vpop.f32.mrf.mxu1 }
 0xbd6   :  { %v632_v38 = vadd.f32 %v600_v21, %v1090_v27 }
 0xbd7   :  { %v549_v16 = vmax.f32 %v548_v15, 0.0 }
 0xbd9   :  { %v1162_v17 = vadd.f32 0.02, %v549_v16 }
 0xbdb   :  { %605 = vperm.xlu1 %947, %v1162_v17  }
 0xc4d   :  { %v606_v18 = vpop.permute.xlu1 %605 }
 0xc4e   :  { %v608_v19 = vmul.f32 %v606_v18, %v1083_v8 }
 0xc50   :  { %v609_v20 = vadd.f32 %v608_v19, %v1086_v10 }
 0xc52   :  { %v610_v22 = vadd.f32 %v609_v20, %v600_v21 }
 0xc54   :  { %v927_v24 = vmul.f32 -1.442695, %v610_v22 }
 0xc56   :  { %980 = vpow2.f32 %v927_v24 }
 0xc5c   :  { %v981_v25 = vpop.eup %980 }
 0xc5d   :  { %v614_v26 = vadd.f32 1.0, %v981_v25 }
 0xc5f   :  { %982 = vrcp.f32 %v614_v26  ;;  %v626_v31 = vand.u32 2147483648, %v614_v26  ;;  %v624_v33 = vand.u32 2147483647, %v614_v26  ;;  %vm620_vm9 = vweird.f32 %v614_v26 }
 0xc61   :  { %v627_v35 = vor.u32 1.1754944e-38, %v626_v31  ;;  %vm625_vm11 = vcmp.eq.f32.partialorder %v624_v33, 8.507059e+37 }
 0xc65   :  { %v983_v28 = vpop.eup %982 }
 0xc66   :  { %v616_v29 = vmul.f32 %v983_v28, %v614_v26  ;;  %vm621_vm8 = vweird.f32 %v983_v28 }
 0xc67   :  { %vm622_vm10 = vmor %vm620_vm9, %vm621_vm8  ;;  %vm892_vm9 = vcmask 15360  }
 0xc68   :  { %v617_v30 = vsub.f32 1.0, %v616_v29 }
 0xc6a   :  { %v618_v32 = vmul.f32 %v983_v28, %v617_v30 }
 0xc6c   :  { %v619_v34 = vadd.f32 %v983_v28, %v618_v32 }
 0xc6e   :  { %v623_v36 = vsel %vm622_vm10, %v983_v28, %v619_v34  ;;  %vm894_vm10 = vcmask 23552  }
 0xc6f   :  { %v628_v37 = vsel %vm625_vm11, %v627_v35, %v623_v36  ;;  %vm896_vm11 = vcmask 31744  }
 0xc70   :  { %630 = vrot.lane.b32.xlu0 %v628_v37, %s1058_s0  ;;  %v636_v57 = vsub.f32 1.0, %v628_v37  ;;  %v642_v59 = vmul.f32 %v628_v37, %v1152_v7 }
 0xce2   :  { %v631_v41 = vpop.permute.xlu0 %630 }
 0xce3   :  { %v633_v42 = vmul.f32 %v632_v38, %v631_v41 }
 0xce5   :  { %v634_v43 = vadd.f32 %v633_v42, %v609_v20 }
 0xce7   :  { %984 = vtanh.f32 %v634_v43 }
 0xce8   :  { %986 = vrcp.f32 %v1170_v45 }
 0xced   :  { %v985_v44 = vpop.eup %984 }
 0xcee   :  { %638 = vrot.lane.b32.xlu1 %v985_v44, %s1059_s13  ;;  %v987_v46 = vpop.eup %986 }
 0xcef   :  { %v36_v47 = vmul.f32 %v987_v46, %v1170_v45  ;;  %vm41_vm13 = vweird.f32 %v987_v46 }
 0xcf0   :  { %vm42_vm14 = vmor %vm40_vm12, %vm41_vm13  ;;  %vm898_vm12 = vcmask 32768  }
 0xcf1   :  { %v37_v49 = vsub.f32 1.0, %v36_v47 }
 0xcf3   :  { %v38_v50 = vmul.f32 %v987_v46, %v37_v49 }
 0xcf5   :  { %v39_v52 = vadd.f32 %v987_v46, %v38_v50 }
 0xcf7   :  { %v43_v55 = vsel %vm42_vm14, %v987_v46, %v39_v52 }
 0xcf8   :  { %v48_v56 = vsel %vm45_vm15, %v47_v54, %v43_v55 }
 0xcf9   :  { %138 = vrot.lane.b32.xlu0 %v48_v56, %s1062_s15 }
 0xd60   :  { %v639_v58 = vpop.permute.xlu1 %638 }
 0xd61   :  { %v641_v60 = vmul.f32 %v639_v58, %v636_v57 }
 0xd63   :  { %v1178_v61 = vadd.f32 %v642_v59, %v641_v60 }
 0xd65   :  { %683 = vrot.lane.b32.xlu1 %v1178_v61, %s1059_s13  ;;  %v644_v63 = vmul.f32 %v1178_v61, %v1095_v39 }
 0xd6b   :  { %v1189_v4 = vpop.permute.xlu0 %138 }
 0xd6d   :  { %132 = vrot.lane.b32.xlu1 %v1170_v45, %s1063_s16 }
 0xd75   :  { %646 = vrot.lane.b32.xlu1 %v644_v63, %s1059_s13 }
 0xdd7   :  { %v684_v0 = vpop.permute.xlu1 %683 }
 0xdd8   :  { %928 = vmatmul.msk.f32.vlgmr.msrb.gmra.mxu2 %vm50_vm4, %v684_v0 }
 0xddf   :  { %v133_v1 = vpop.permute.xlu1 %132 }
 0xde0   :  { %v135_v2 = vmul.f32 %v133_v1, %v1170_v45 }
 0xde2   :  { %v136_v5 = vmul.f32 %v135_v2, %v1102_v48 }
 0xde4   :  { %v141_v6 = vmul.f32 %v1189_v4, %v136_v5 }
 0xde6   :  { %156 = vrot.lane.b32.xlu0 %v141_v6, %s1064_s17  ;;  %v154_v21 = vsub.f32 %v1170_v45, %v141_v6 }
 0xde7   :  { %v647_v7 = vpop.permute.xlu1 %646 }
 0xde8   :  { %v649_v9 = vsel %vm124_vm5, %v647_v7, 0.0 }
 0xde9   :  { %650 = vadd.xlane.f32.xlu2 %v649_v9 }
 0xe58   :  { %v157_v12 = vpop.permute.xlu0 %156 }
 0xe59   :  { %v159_v14 = vadd.f32 %v157_v12, %v1170_v45 }
 0xe5b   :  { %v160_v48 = vsub.f32 %v159_v14, %v1196_v11  ;;  %v704_v32 = vpop.f32.mrf.mxu2 }
 0xe5c   :  { %v651_v15 = vpop.xlane.xlu2 %650  ;;  %v736_v60 = vadd.f32 %v704_v32, %v1090_v27 }
 0xe5d   :  { %v161_v16 = vsub.f32 %v160_v48, %v1199_v13  ;;  %v652_v18 = vadd.f32 %v651_v15, %v1080_v3 }
 0xe5f   :  { %v653_v19 = vmax.f32 %v652_v18, 0.0  ;;  %240 = vrot.lane.b32.xlu1 %v161_v16, %s1063_s16  ;;  %v1215_v42 = vmul.f32 0.05, %v161_v16  ;;  %v1217_v44 = vmul.f32 0.01, %v161_v16 }
 0xe61   :  { %v1206_v20 = vadd.f32 0.02, %v653_v19 }
 0xe63   :  { %709 = vperm.xlu0 %949, %v1206_v20  }
 0xed1   :  { %v241_v22 = vpop.permute.xlu1 %240 }
 0xed2   :  { %v243_v24 = vmul.f32 %v241_v22, %v154_v21 }
 0xed4   :  { %v244_v25 = vmul.f32 %v243_v24, %v1116_v23 }
 0xed5   :  { %v710_v29 = vpop.permute.xlu0 %709 }
 0xed6   :  { %v245_v26 = vmul.f32 %v244_v25, %v1189_v4  ;;  %v712_v30 = vmul.f32 %v710_v29, %v1083_v8 }
 0xed8   :  { %260 = vrot.lane.b32.xlu2 %v245_v26, %s1064_s17  ;;  %v258_v28 = vsub.f32 %v154_v21, %v245_v26  ;;  %v713_v31 = vadd.f32 %v712_v30, %v1086_v10 }
 0xeda   :  { %v714_v33 = vadd.f32 %v713_v31, %v704_v32 }
 0xedc   :  { %v929_v34 = vmul.f32 -1.442695, %v714_v33 }
 0xede   :  { %988 = vpow2.f32 %v929_v34 }
 0xee4   :  { %v989_v35 = vpop.eup %988 }
 0xee5   :  { %v718_v36 = vadd.f32 1.0, %v989_v35 }
 0xee7   :  { %990 = vrcp.f32 %v718_v36  ;;  %v730_v51 = vand.u32 2147483648, %v718_v36  ;;  %vm724_vm1 = vweird.f32 %v718_v36  ;;  %v728_v52 = vand.u32 2147483647, %v718_v36 }
 0xee9   :  { %v731_v54 = vor.u32 1.1754944e-38, %v730_v51  ;;  %vm729_vm3 = vcmp.eq.f32.partialorder %v728_v52, 8.507059e+37 }
 0xeed   :  { %v991_v37 = vpop.eup %990 }
 0xeee   :  { %v720_v38 = vmul.f32 %v991_v37, %v718_v36  ;;  %vm725_vm0 = vweird.f32 %v991_v37 }
 0xeef   :  { %vm726_vm2 = vmor %vm724_vm1, %vm725_vm0 }
 0xef0   :  { %v721_v23 = vsub.f32 1.0, %v720_v38 }
 0xef2   :  { %v722_v47 = vmul.f32 %v991_v37, %v721_v23 }
 0xef4   :  { %v723_v50 = vadd.f32 %v991_v37, %v722_v47 }
 0xef6   :  { %v727_v53 = vsel %vm726_vm2, %v991_v37, %v723_v50 }
 0xef7   :  { %v732_v55 = vsel %vm729_vm3, %v731_v54, %v727_v53 }
 0xef8   :  { %v740_v48 = vsub.f32 1.0, %v732_v55 }
 0xf32   :  { %v261_v41 = vpop.permute.xlu2 %260 }
 0xf33   :  { %v263_v43 = vadd.f32 %v261_v41, %v161_v16  ;;  %v746_v16 = vmul.f32 %v732_v55, %v1178_v61 }
 0xf35   :  { %v264_v46 = vsub.f32 %v263_v43, %v1215_v42 }
 0xf37   :  { %v265_v49 = vsub.f32 %v264_v46, %v1217_v44 }
 0xf39   :  { %344 = vrot.lane.b32.xlu1 %v265_v49, %s1063_s16  ;;  %v350_v7 = vmul.f32 0.05, %v265_v49  ;;  %v1228_v12 = vmul.f32 0.01, %v265_v49 }
 0xf41   :  { %734 = vrot.lane.b32.xlu1 %v732_v55, %s1058_s0 }
 0xfab   :  { %v345_v56 = vpop.permute.xlu1 %344 }
 0xfac   :  { %v347_v57 = vmul.f32 %v345_v56, %v258_v28 }
 0xfae   :  { %v348_v58 = vmul.f32 %v347_v57, %v1130_v62 }
 0xfb0   :  { %v349_v59 = vmul.f32 %v348_v58, %v1189_v4 }
 0xfb2   :  { %364 = vrot.lane.b32.xlu0 %v349_v59, %s1064_s17  ;;  %v362_v63 = vsub.f32 %v258_v28, %v349_v59 }
 0xfb3   :  { %v735_v0 = vpop.permute.xlu1 %734 }
 0xfb4   :  { %v737_v1 = vmul.f32 %v736_v60, %v735_v0 }
 0xfb6   :  { %v738_v2 = vadd.f32 %v737_v1, %v713_v31 }
 0xfb8   :  { %992 = vtanh.f32 %v738_v2 }
 0xfbe   :  { %v993_v5 = vpop.eup %992 }
 0xfbf   :  { %742 = vrot.lane.b32.xlu1 %v993_v5, %s1059_s13 }
0x1024   :  { %v365_v6 = vpop.permute.xlu0 %364 }
0x1025   :  { %v367_v9 = vadd.f32 %v365_v6, %v265_v49 }
0x1027   :  { %v368_v62 = vsub.f32 %v367_v9, %v350_v7 }
0x1029   :  { %v369_v14 = vsub.f32 %v368_v62, %v1228_v12 }
0x102b   :  { %448 = vrot.lane.b32.xlu0 %v369_v14, %s1063_s16  ;;  %v454_v31 = vmul.f32 0.05, %v369_v14 }
0x1031   :  { %v743_v15 = vpop.permute.xlu1 %742 }
0x1032   :  { %v745_v18 = vmul.f32 %v743_v15, %v740_v48 }
0x1034   :  { %v1233_v19 = vadd.f32 %v746_v16, %v745_v18 }
0x1036   :  { %787 = vrot.lane.b32.xlu2 %v1233_v19, %s1059_s13  ;;  %v748_v21 = vmul.f32 %v1233_v19, %v1095_v39 }
0x1038   :  { %750 = vrot.lane.b32.xlu0 %v748_v21, %s1059_s13 }
0x1090   :  { %v788_v22 = vpop.permute.xlu2 %787 }
0x1091   :  { %930 = vmatmul.msk.f32.vlgmr.msrb.gmra.mxu3 %vm50_vm4, %v788_v22 }
0x109d   :  { %v449_v24 = vpop.permute.xlu0 %448 }
0x109e   :  { %v451_v25 = vmul.f32 %v449_v24, %v362_v63 }
0x10a0   :  { %v452_v26 = vmul.f32 %v451_v25, %v1144_v40  ;;  %v1249_v40 = vmul.f32 0.01, %v369_v14 }
0x10a2   :  { %v453_v61 = vmul.f32 %v452_v26, %v1189_v4 }
0x10a4   :  { %468 = vrot.lane.b32.xlu1 %v453_v61, %s1064_s17  ;;  %v466_v28 = vsub.f32 %v362_v63, %v453_v61 }
0x10aa   :  { %v751_v29 = vpop.permute.xlu0 %750 }
0x10ab   :  { %v753_v30 = vsel %vm124_vm5, %v751_v29, 0.0 }
0x10ce   :  { %754 = vadd.xlane.f32.xlu1 %v753_v30 }
0x10e7   :  { %145 = vrot.lane.b32.xlu1 %v1196_v11, %s1064_s17 }
0x10ef   :  { %353 = vrot.lane.b32.xlu1 %v350_v7, %s1064_s17 }
0x10f7   :  { %457 = vrot.lane.b32.xlu1 %v454_v31, %s1064_s17 }
0x1116   :  { %v469_v32 = vpop.permute.xlu1 %468 }
0x1117   :  { %v471_v33 = vadd.f32 %v469_v32, %v369_v14 }
0x1119   :  { %v472_v34 = vsub.f32 %v471_v33, %v454_v31 }
0x111b   :  { %v473_v35 = vsub.f32 %v472_v34, %v1249_v40 }
0x111d   :  { %552 = vrot.lane.b32.xlu2 %v473_v35, %s1063_s16  ;;  %v559_v36 = vmul.f32 0.01, %v473_v35  ;;  %v558_v5 = vmul.f32 0.05, %v473_v35 }
0x111f   :  { %566 = vrot.lane.b32.xlu1 %v559_v36, %s1065_s18 }
0x1141   :  { %v755_v37 = vpop.xlane.xlu1 %754 }
0x1142   :  { %v756_v11 = vadd.f32 %v755_v37, %v1080_v3  ;;  %v808_v3 = vpop.f32.mrf.mxu3 }
0x1143   :  { %v840_v48 = vadd.f32 %v808_v3, %v1090_v27 }
0x1144   :  { %v757_v38 = vmax.f32 %v756_v11, 0.0 }
0x1146   :  { %v1255_v23 = vadd.f32 0.02, %v757_v38 }
0x1148   :  { %813 = vperm.xlu2 %948, %v1255_v23  }
0x1177   :  { %v553_v41 = vpop.permute.xlu2 %552 }
0x1178   :  { %v555_v43 = vmul.f32 %v553_v41, %v466_v28 }
0x117a   :  { %v556_v46 = vmul.f32 %v555_v43, %v1162_v17 }
0x117c   :  { %v557_v47 = vmul.f32 %v556_v46, %v1189_v4 }
0x117e   :  { %572 = vrot.lane.b32.xlu0 %v557_v47, %s1064_s17  ;;  %v570_v49 = vsub.f32 %v466_v28, %v557_v47 }
0x11a2   :  { %v814_v50 = vpop.permute.xlu2 %813 }
0x11a3   :  { %v816_v51 = vmul.f32 %v814_v50, %v1083_v8 }
0x11a5   :  { %v817_v52 = vadd.f32 %v816_v51, %v1086_v10 }
0x11a7   :  { %v818_v53 = vadd.f32 %v817_v52, %v808_v3 }
0x11a9   :  { %v931_v54 = vmul.f32 -1.442695, %v818_v53 }
0x11ab   :  { %994 = vpow2.f32 %v931_v54 }
0x11b1   :  { %v995_v55 = vpop.eup %994 }
0x11b2   :  { %v822_v56 = vadd.f32 1.0, %v995_v55 }
0x11b4   :  { %996 = vrcp.f32 %v822_v56  ;;  %v834_v59 = vand.u32 2147483648, %v822_v56  ;;  %v832_v63 = vand.u32 2147483647, %v822_v56  ;;  %vm828_vm6 = vweird.f32 %v822_v56 }
0x11b6   :  { %v835_v8 = vor.u32 1.1754944e-38, %v834_v59  ;;  %vm833_vm8 = vcmp.eq.f32.partialorder %v832_v63, 8.507059e+37 }
0x11ba   :  { %v997_v57 = vpop.eup %996 }
0x11bb   :  { %v824_v58 = vmul.f32 %v997_v57, %v822_v56  ;;  %vm829_vm4 = vweird.f32 %v997_v57 }
0x11bc   :  { %vm830_vm7 = vmor %vm828_vm6, %vm829_vm4 }
0x11bd   :  { %v825_v17 = vsub.f32 1.0, %v824_v58 }
0x11bf   :  { %v826_v60 = vmul.f32 %v997_v57, %v825_v17  ;;  %v146_v17 = vpop.permute.xlu1 %145 }
0x11c1   :  { %v827_v0 = vadd.f32 %v997_v57, %v826_v60 }
0x11c3   :  { %v831_v1 = vsel %vm830_vm7, %v997_v57, %v827_v0 }
0x11c4   :  { %v836_v10 = vsel %vm833_vm8, %v835_v8, %v831_v1  ;;  %v148_v1 = vadd.f32 %v146_v17, %v1170_v45 }
0x11c5   :  { %838 = vrot.lane.b32.xlu2 %v836_v10, %s1058_s0  ;;  %v844_v31 = vsub.f32 1.0, %v836_v10  ;;  %v850_v33 = vmul.f32 %v836_v10, %v1233_v19 }
0x11c7   :  { %v354_v60 = vpop.permute.xlu1 %353 }
0x11cf   :  { %v458_v0 = vpop.permute.xlu1 %457 }
0x11d7   :  { %v567_v10 = vpop.permute.xlu1 %566 }
0x11f0   :  { %v573_v2 = vpop.permute.xlu0 %572 }
0x11f1   :  { %v575_v6 = vadd.f32 %v573_v2, %v473_v35 }
0x11f3   :  { %v576_v7 = vsub.f32 %v575_v6, %v558_v5 }
0x11f5   :  { %v577_v9 = vsub.f32 %v576_v7, %v559_v36 }
0x11f7   :  { %656 = vrot.lane.b32.xlu0 %v577_v9, %s1063_s16  ;;  %v662_v62 = vmul.f32 0.05, %v577_v9  ;;  %v663_v29 = vmul.f32 0.01, %v577_v9 }
0x11f9   :  { %665 = vrot.lane.b32.xlu1 %v662_v62, %s1064_s17 }
0x121f   :  { %v839_v14 = vpop.permute.xlu2 %838 }
0x1220   :  { %v841_v15 = vmul.f32 %v840_v48, %v839_v14 }
0x1222   :  { %v842_v22 = vadd.f32 %v841_v15, %v817_v52  ;;  %v1000_v52 = vld [vmem:[#allocation2 + $0x24] sm:$0x1] }
0x1224   :  { %998 = vtanh.f32 %v842_v22 }
0x122a   :  { %v999_v26 = vpop.eup %998 }
0x1269   :  { %v657_v16 = vpop.permute.xlu0 %656 }
0x126a   :  { %v659_v18 = vmul.f32 %v657_v16, %v570_v49 }
0x126c   :  { %v660_v21 = vmul.f32 %v659_v18, %v1206_v20 }
0x126e   :  { %v661_v24 = vmul.f32 %v660_v21, %v1189_v4 }
0x1270   :  { %676 = vrot.lane.b32.xlu0 %v661_v24, %s1064_s17  ;;  %v674_v25 = vsub.f32 %v570_v49, %v661_v24 }
0x1278   :  { %846 = vrot.lane.b32.xlu0 %v999_v26, %s1059_s13 }
0x12e2   :  { %v677_v61 = vpop.permute.xlu0 %676 }
0x12e3   :  { %v679_v28 = vadd.f32 %v677_v61, %v577_v9  ;;  %v666_v9 = vpop.permute.xlu1 %665 }
0x12e5   :  { %v680_v30 = vsub.f32 %v679_v28, %v662_v62 }
0x12e7   :  { %v681_v27 = vsub.f32 %v680_v30, %v663_v29 }
0x12e9   :  { %760 = vrot.lane.b32.xlu2 %v681_v27, %s1063_s16  ;;  %v766_v32 = vmul.f32 0.05, %v681_v27 }
0x12ea   :  { %v847_v20 = vpop.permute.xlu0 %846 }
0x12eb   :  { %v849_v34 = vmul.f32 %v847_v20, %v844_v31  ;;  %769 = vrot.lane.b32.xlu1 %v766_v32, %s1064_s17 }
0x12ed   :  { %v851_v35 = vadd.f32 %v850_v33, %v849_v34 }
0x12ef   :  { %v852_v36 = vmul.f32 %v851_v35, %v1095_v39  ;;  %v767_v39 = vmul.f32 0.01, %v681_v27 }
0x12f1   :  { %854 = vrot.lane.b32.xlu0 %v852_v36, %s1059_s13 }
0x1343   :  { %v761_v37 = vpop.permute.xlu2 %760 }
0x1344   :  { %v763_v11 = vmul.f32 %v761_v37, %v674_v25 }
0x1346   :  { %v764_v38 = vmul.f32 %v763_v11, %v1255_v23 }
0x1348   :  { %v765_v41 = vmul.f32 %v764_v38, %v1189_v4 }
0x134a   :  { %780 = vrot.lane.b32.xlu2 %v765_v41, %s1064_s17  ;;  %v1279_v43 = vsub.f32 %v674_v25, %v765_v41 }
0x135d   :  { %v770_v22 = vpop.permute.xlu1 %769 }
0x1363   :  { %v855_v46 = vpop.permute.xlu0 %854 }
0x1364   :  { %v857_v19 = vsel %vm124_vm5, %v855_v46, 0.0  ;;  %vm890_vm5 = vcmask 7168  }
0x1373   :  { %858 = vadd.xlane.f32.xlu2 %v857_v19 }
0x138b   :  { %462 = vrot.lane.b32.xlu2 %v1249_v40, %s1065_s18 }
0x1393   :  { %774 = vrot.lane.b32.xlu2 %v767_v39, %s1065_s18 }
0x13a4   :  { %v781_v47 = vpop.permute.xlu2 %780 }
0x13a5   :  { %v783_v49 = vadd.f32 %v781_v47, %v681_v27 }
0x13a7   :  { %v784_v50 = vsub.f32 %v783_v49, %v766_v32 }
0x13a9   :  { %v785_v23 = vsub.f32 %v784_v50, %v767_v39 }
0x13ab   :  { %864 = vrot.lane.b32.xlu0 %v785_v23, %s1063_s16  ;;  %v871_v51 = vmul.f32 0.01, %v785_v23 }
0x13ad   :  { %878 = vrot.lane.b32.xlu1 %v871_v51, %s1065_s18 }
0x13b3   :  { %150 = vrot.lane.b32.xlu0 %v1199_v13, %s1065_s18 }
0x13bb   :  { %249 = vrot.lane.b32.xlu0 %v1215_v42, %s1064_s17 }
0x13c3   :  { %254 = vrot.lane.b32.xlu0 %v1217_v44, %s1065_s18 }
0x13cb   :  { %358 = vrot.lane.b32.xlu0 %v1228_v12, %s1065_s18  ;;  %v870_v12 = vmul.f32 0.05, %v785_v23 }
0x13d3   :  { %561 = vrot.lane.b32.xlu0 %v558_v5, %s1064_s17 }
0x13db   :  { %670 = vrot.lane.b32.xlu0 %v663_v29, %s1065_s18 }
0x13e6   :  { %v859_v40 = vpop.xlane.xlu2 %858 }
0x13e7   :  { %v860_v3 = vadd.f32 %v1000_v52, %v859_v40 }
0x13e9   :  { %v861_v53 = vmax.f32 %v860_v3, 0.0 }
0x13eb   :  { %v862_v55 = vadd.f32 0.02, %v861_v53 }
0x13ee   :  { %v463_v14 = vpop.permute.xlu2 %462 }
0x13f6   :  { %v775_v28 = vpop.permute.xlu2 %774 }
0x141d   :  { %v865_v54 = vpop.permute.xlu0 %864 }
0x141e   :  { %v867_v13 = vmul.f32 %v865_v54, %v1279_v43 }
0x141f   :  { %v879_v32 = vpop.permute.xlu1 %878 }
0x1420   :  { %v868_v56 = vmul.f32 %v867_v13, %v862_v55 }
0x1422   :  { %v869_v42 = vmul.f32 %v868_v56, %v1189_v4 }
0x1424   :  { %884 = vrot.lane.b32.xlu0 %v869_v42, %s1064_s17  ;;  %v882_v44 = vsub.f32 %v1279_v43, %v869_v42 }
0x1425   :  { %v151_v57 = vpop.permute.xlu0 %150 }
0x1426   :  { %v153_v4 = vadd.f32 %v151_v57, %v1170_v45 }
0x142c   :  { %873 = vrot.lane.b32.xlu0 %v870_v12, %s1064_s17 }
0x142d   :  { %v250_v58 = vpop.permute.xlu0 %249 }
0x142e   :  { %v252_v2 = vadd.f32 %v250_v58, %v148_v1 }
0x1430   :  { %v356_v62 = vadd.f32 %v354_v60, %v252_v2 }
0x1432   :  { %v460_v15 = vadd.f32 %v458_v0, %v356_v62 }
0x1435   :  { %v255_v59 = vpop.permute.xlu0 %254 }
0x1436   :  { %v257_v5 = vadd.f32 %v255_v59, %v153_v4 }
0x143d   :  { %v359_v63 = vpop.permute.xlu0 %358 }
0x143e   :  { %v361_v6 = vadd.f32 %v359_v63, %v257_v5 }
0x1440   :  { %v465_v48 = vadd.f32 %v463_v14, %v361_v6 }
0x1442   :  { %v569_v18 = vadd.f32 %v567_v10, %v465_v48 }
0x1445   :  { %v562_v8 = vpop.permute.xlu0 %561 }
0x1446   :  { %v564_v16 = vadd.f32 %v562_v8, %v460_v15 }
0x1448   :  { %v668_v26 = vadd.f32 %v666_v9, %v564_v16 }
0x144a   :  { %v772_v27 = vadd.f32 %v770_v22, %v668_v26 }
0x144d   :  { %v671_v7 = vpop.permute.xlu0 %670 }
0x144e   :  { %v673_v25 = vadd.f32 %v671_v7, %v569_v18 }
0x1450   :  { %v777_v29 = vadd.f32 %v775_v28, %v673_v25 }
0x1452   :  { %v881_v33 = vadd.f32 %v879_v32, %v777_v29 }
0x1496   :  { %v885_v21 = vpop.permute.xlu0 %884 }
0x1497   :  { %v887_v24 = vadd.f32 %v885_v21, %v785_v23 }
0x1499   :  { %v888_v61 = vsub.f32 %v887_v24, %v870_v12 }
0x149b   :  { %v889_v30 = vsub.f32 %v888_v61, %v871_v51 }
0x149d   :  { %v891_v34 = vsel %vm890_vm5, %v882_v44, %v889_v30 }
0x149e   :  { %v874_v31 = vpop.permute.xlu0 %873 }
0x149f   :  { %v876_v20 = vadd.f32 %v874_v31, %v772_v27 }
0x14a1   :  { %v893_v35 = vsel %vm892_vm9, %v891_v34, %v876_v20 }
0x14a2   :  { %v895_v36 = vsel %vm894_vm10, %v893_v35, %v881_v33 }
0x14a3   :  { %v897_v37 = vsel %vm896_vm11, %v895_v36, %v1170_v45 }
0x14a4   :  { %899 = vst.msk [vmem:[#allocation5] sm:$0x1] %vm898_vm12, %v897_v37 }
0x14a5   :  { %910 = dma.vmem_to_hbm [thread:$0]  %s906_s20, 16, %s908_s23, [#allocation4]  }
0x14a6   :  { %1051 = dma.done.wait [#allocation4], 16  }
0x14a7   :  { %1052 = vsyncadd [#allocation4], 4294967280 }
0x14a8   :  { %915 = vsyncpa [#allocation3], 1 }
0x14a9   :  { %916 = vsyncpa [#allocation4], 1 }

</bundles_post_ra>
